<compile_context>
chip_gen: v6e
topology: v6e:2x2x1
jax: 0.10.0
libtpu: 0.0.40
codegen_flags: <defaults>
</compile_context>

<pallas_src>
import functools

import jax
import jax.numpy as jnp
from jax.experimental import pallas as pl
from jax.experimental.pallas import tpu as pltpu


# ----------------------------------------------------------------------------
# Fused kernel: BiLSTM (both sentences stacked in batch) + max-over-time
#               + |diff| + Linear + log_softmax.
# ----------------------------------------------------------------------------
def fused_bilstm_head_kernel(x_ref, wih_ref, whh_ref, b_ref, wlin_ref,
                             blin_ref, out_ref, xw_sc, *, seq_len, batch,
                             hidden):
    S = seq_len
    B = batch
    BB = 2 * B                 # both sentences stacked along batch
    H = hidden
    H2 = 2 * H                 # fused state width  [h_fwd | h_bwd]
    G = 8 * H                  # fused gate width   (2 dirs x 4 gates)

    # (1) Hoisted input projection for every time step and both directions:
    #     a single (S*2B, H) @ (H, 8H) MXU call, result parked in VMEM.
    xw_sc[...] = (jnp.dot(x_ref[...], wih_ref[...],
                          preferred_element_type=jnp.float32) + b_ref[...])

    # Gate lanes are ordered [i_f i_r f_f f_r g_f g_r o_f o_r] (each H wide);
    # the forward-direction lanes are the first H of every 2H group.
    lane = jax.lax.broadcasted_iota(jnp.int32, (BB, G), 1)
    fwd_mask = (lane % H2) < H

    whh = whh_ref[...]         # (2H, 8H) block-diagonal by direction

    h = jnp.zeros((BB, H2), jnp.float32)
    c = jnp.zeros((BB, H2), jnp.float32)
    mx = jnp.full((BB, H2), -jnp.inf, jnp.float32)

    # (2) Fully unrolled recurrence. Forward direction reads time t, backward
    #     direction reads time S-1-t (max over time is order-invariant, so no
    #     output reversal is needed).
    for t in range(S):
        xw_f = xw_sc[pl.ds(t * BB, BB), :]
        xw_b = xw_sc[pl.ds((S - 1 - t) * BB, BB), :]
        inp = jnp.where(fwd_mask, xw_f, xw_b)
        gates = inp + jnp.dot(h, whh, preferred_element_type=jnp.float32)

        i_g = jax.nn.sigmoid(gates[:, 0 * H2:1 * H2])
        f_g = jax.nn.sigmoid(gates[:, 1 * H2:2 * H2])
        g_g = jnp.tanh(gates[:, 2 * H2:3 * H2])
        o_g = jax.nn.sigmoid(gates[:, 3 * H2:4 * H2])

        c = f_g * c + i_g * g_g
        h = o_g * jnp.tanh(c)
        mx = jnp.maximum(mx, h)

    # (3) Classification head, fused: rows 0:B are sentence 1, B:2B sentence 2.
    diff = jnp.abs(mx[:B, :] - mx[B:, :])                       # (B, 2H)
    logits = (jnp.dot(diff, wlin_ref[...],
                      preferred_element_type=jnp.float32) + blin_ref[...])
    m = jnp.max(logits, axis=-1, keepdims=True)
    lse = jnp.log(jnp.sum(jnp.exp(logits - m), axis=-1, keepdims=True)) + m
    out_ref[...] = logits - lse


def bilstm_paraphrase_call(x_flat, w_ih_blk, w_hh_blk, b_blk, w_lin, b_lin,
                           *, seq_len, batch, hidden, n_classes):
    kernel = functools.partial(fused_bilstm_head_kernel,
                               seq_len=seq_len, batch=batch, hidden=hidden)
    return pl.pallas_call(
        kernel,
        out_shape=jax.ShapeDtypeStruct((batch, n_classes), jnp.float32),
        scratch_shapes=[
            pltpu.VMEM((seq_len * 2 * batch, 8 * hidden), jnp.float32),
        ],
    )(x_flat, w_ih_blk, w_hh_blk, b_blk, w_lin, b_lin)


# ----------------------------------------------------------------------------
# Weight packing: interleave gate columns [i_f i_r f_f f_r g_f g_r o_f o_r]
# and build the block-diagonal recurrent matrix (2H, 8H).
# ----------------------------------------------------------------------------
def _pack_bilstm_weights(w_ih_f, w_hh_f, b_f, w_ih_r, w_hh_r, b_r):
    H = w_ih_f.shape[0]

    def interleave(a, b):                 # (R, 4H),(R, 4H) -> (R, 8H)
        R = a.shape[0]
        return jnp.stack([a.reshape(R, 4, H), b.reshape(R, 4, H)],
                         axis=2).reshape(R, 8 * H)

    w_ih_blk = interleave(w_ih_f, w_ih_r)                          # (H, 8H)
    z = jnp.zeros_like(w_hh_f)
    w_hh_blk = jnp.concatenate([interleave(w_hh_f, z),
                                interleave(z, w_hh_r)], axis=0)    # (2H, 8H)
    b_blk = interleave(b_f.reshape(1, -1), b_r.reshape(1, -1))     # (1, 8H)
    return w_ih_blk, w_hh_blk, b_blk


# ----------------------------------------------------------------------------
# Full model forward.
# ----------------------------------------------------------------------------
@jax.jit
def model_forward(params, input1, input2):
    emb = params["embedding"]                    # (V, H)
    H = emb.shape[1]
    S, B = input1.shape
    C = params["w_lin"].shape[1]

    # Embedding gather for both sentences at once (glue, plain JAX).
    tokens = jnp.concatenate([input1, input2], axis=1)             # (S, 2B)
    x_flat = jnp.take(emb, tokens.reshape(-1), axis=0)             # (S*2B, H)
    x_flat = x_flat.astype(jnp.float32)

    w_ih_blk, w_hh_blk, b_blk = _pack_bilstm_weights(
        params["w_ih_f"], params["w_hh_f"], params["b_f"],
        params["w_ih_r"], params["w_hh_r"], params["b_r"])

    return bilstm_paraphrase_call(
        x_flat, w_ih_blk, w_hh_blk, b_blk, params["w_lin"], params["b_lin"],
        seq_len=S, batch=B, hidden=H, n_classes=C)


# ----------------------------------------------------------------------------
# Pure-JAX reference (for correctness check).
# ----------------------------------------------------------------------------
def ref_lstm_max(x, w_ih, w_hh, b):
    S, B, H = x.shape

    def step(carry, xt):
        h, c = carry
        g = xt @ w_ih + h @ w_hh + b
        i = jax.nn.sigmoid(g[:, :H])
        f = jax.nn.sigmoid(g[:, H:2 * H])
        gg = jnp.tanh(g[:, 2 * H:3 * H])
        o = jax.nn.sigmoid(g[:, 3 * H:])
        c = f * c + i * gg
        h = o * jnp.tanh(c)
        return (h, c), h

    (_, _), hs = jax.lax.scan(
        step, (jnp.zeros((B, H)), jnp.zeros((B, H))), x)
    return hs.max(axis=0)


def ref_forward(params, input1, input2):
    emb = params["embedding"]

    def encode(tokens):
        x = jnp.take(emb, tokens, axis=0).astype(jnp.float32)
        fwd = ref_lstm_max(x, params["w_ih_f"], params["w_hh_f"], params["b_f"])
        bwd = ref_lstm_max(x[::-1], params["w_ih_r"], params["w_hh_r"],
                           params["b_r"])
        return jnp.concatenate([fwd, bwd], axis=-1)

    diff = jnp.abs(encode(input1) - encode(input2))
    logits = diff @ params["w_lin"] + params["b_lin"]
    return jax.nn.log_softmax(logits, axis=1)


# ----------------------------------------------------------------------------
if __name__ == "__main__":
    VOCAB, HIDDEN, N_CLASSES = 50, 32, 2
    SEQ, BATCH = 8, 8

    key = jax.random.PRNGKey(0)
    ks = jax.random.split(key, 12)
    s = 1.0 / jnp.sqrt(HIDDEN)

    params = {
        "embedding": jax.random.normal(ks[0], (VOCAB, HIDDEN), jnp.float32),
        # LSTM weights stored transposed: (H, 4H); biases combined (b_ih+b_hh).
        "w_ih_f": jax.random.uniform(ks[1], (HIDDEN, 4 * HIDDEN), jnp.float32, -s, s),
        "w_hh_f": jax.random.uniform(ks[2], (HIDDEN, 4 * HIDDEN), jnp.float32, -s, s),
        "b_f": jax.random.uniform(ks[3], (1, 4 * HIDDEN), jnp.float32, -s, s)
               + jax.random.uniform(ks[4], (1, 4 * HIDDEN), jnp.float32, -s, s),
        "w_ih_r": jax.random.uniform(ks[5], (HIDDEN, 4 * HIDDEN), jnp.float32, -s, s),
        "w_hh_r": jax.random.uniform(ks[6], (HIDDEN, 4 * HIDDEN), jnp.float32, -s, s),
        "b_r": jax.random.uniform(ks[7], (1, 4 * HIDDEN), jnp.float32, -s, s)
               + jax.random.uniform(ks[8], (1, 4 * HIDDEN), jnp.float32, -s, s),
        # Linear (2H -> C), stored as (2H, C) plus (1, C) bias.
        "w_lin": jax.random.uniform(ks[9], (2 * HIDDEN, N_CLASSES), jnp.float32,
                                    -1.0 / jnp.sqrt(2 * HIDDEN),
                                    1.0 / jnp.sqrt(2 * HIDDEN)),
        "b_lin": jax.random.uniform(ks[10], (1, N_CLASSES), jnp.float32,
                                    -1.0 / jnp.sqrt(2 * HIDDEN),
                                    1.0 / jnp.sqrt(2 * HIDDEN)),
    }

    tok_key1, tok_key2 = jax.random.split(ks[11])
    input1 = jax.random.randint(tok_key1, (SEQ, BATCH), 0, VOCAB, jnp.int32)
    input2 = jax.random.randint(tok_key2, (SEQ, BATCH), 0, VOCAB, jnp.int32)

    out = model_forward(params, input1, input2)
    out = jax.block_until_ready(out)

    ref = ref_forward(params, input1, input2)
    assert out.shape == (BATCH, N_CLASSES)
    assert jnp.allclose(out, ref, rtol=1e-4, atol=1e-4), (out, ref)

    print("KERNEL_OK")
</pallas_src>

<mosaic_0001>
module attributes {stable_mosaic.version = 11 : i64} {
  func.func @fused_bilstm_head_kernel(%arg0: memref<128x32xf32, #tpu.memory_space<vmem>>, %arg1: memref<32x256xf32, #tpu.memory_space<vmem>>, %arg2: memref<64x256xf32, #tpu.memory_space<vmem>>, %arg3: memref<1x256xf32, #tpu.memory_space<vmem>>, %arg4: memref<64x2xf32, #tpu.memory_space<vmem>>, %arg5: memref<1x2xf32, #tpu.memory_space<vmem>>, %arg6: memref<8x2xf32, #tpu.memory_space<vmem>>, %arg7: memref<128x256xf32, #tpu.memory_space<vmem>>) attributes {dimension_semantics = [], scalar_prefetch = 0 : i64, scratch_operands = 1 : i64, tpu.core_type = #tpu.core_type<tc>} {
    %c0 = arith.constant 0 : index
    %c0_0 = arith.constant 0 : index
    %0 = vector.load %arg0[%c0, %c0_0] : memref<128x32xf32, #tpu.memory_space<vmem>>, vector<128x32xf32>
    %c0_1 = arith.constant 0 : index
    %c0_2 = arith.constant 0 : index
    %1 = vector.load %arg1[%c0_1, %c0_2] : memref<32x256xf32, #tpu.memory_space<vmem>>, vector<32x256xf32>
    %cst = arith.constant dense<0.000000e+00> : vector<128x256xf32>
    %2 = tpu.matmul %0, %1, %cst {dimension_numbers = #tpu.dot_dimension_numbers<[1], [0], [0], [1], [0, 0, 1, 1], [], []>} : vector<128x32xf32>, vector<32x256xf32>, vector<128x256xf32> -> vector<128x256xf32>
    %c0_3 = arith.constant 0 : index
    %c0_4 = arith.constant 0 : index
    %3 = vector.load %arg3[%c0_3, %c0_4] : memref<1x256xf32, #tpu.memory_space<vmem>>, vector<1x256xf32>
    %4 = vector.broadcast %3 : vector<1x256xf32> to vector<128x256xf32>
    %5 = arith.addf %2, %4 : vector<128x256xf32>
    %c0_5 = arith.constant 0 : index
    %c0_6 = arith.constant 0 : index
    %6 = vector.load %arg7[%c0_5, %c0_6] : memref<128x256xf32, #tpu.memory_space<vmem>>, vector<128x256xf32>
    tpu.vector_store %arg7[%c0_5, %c0_6], %5 {strides = array<i32>} : memref<128x256xf32, #tpu.memory_space<vmem>>, vector<128x256xf32>,
    %7 = tpu.iota {dimensions = array<i32: 1>} : vector<16x256xi32>
    %c64_i32 = arith.constant 64 : i32
    %c0_i32 = arith.constant 0 : i32
    %8 = arith.cmpi eq, %c64_i32, %c0_i32 : i32
    %c1_i32 = arith.constant 1 : i32
    %9 = arith.select %8, %c1_i32, %c64_i32 : i32
    %10 = vector.broadcast %9 : i32 to vector<16x256xi32>
    %11 = arith.remsi %7, %10 : vector<16x256xi32>
    %c0_i32_7 = arith.constant 0 : i32
    %12 = vector.broadcast %c0_i32_7 : i32 to vector<16x256xi32>
    %13 = arith.cmpi ne, %11, %12 : vector<16x256xi32>
    %c0_i32_8 = arith.constant 0 : i32
    %14 = vector.broadcast %c0_i32_8 : i32 to vector<16x256xi32>
    %15 = arith.cmpi slt, %11, %14 : vector<16x256xi32>
    %c0_i32_9 = arith.constant 0 : i32
    %16 = arith.cmpi slt, %9, %c0_i32_9 : i32
    %17 = vector.broadcast %16 : i1 to vector<16x256xi1>
    %18 = vector.broadcast %17 : vector<16x256xi1> to vector<16x256xi1>
    %19 = arith.xori %15, %18 : vector<16x256xi1>
    %20 = arith.andi %19, %13 : vector<16x256xi1>
    %21 = vector.broadcast %9 : i32 to vector<16x256xi32>
    %22 = arith.addi %11, %21 : vector<16x256xi32>
    %23 = arith.select %20, %22, %11 : vector<16x256xi1>, vector<16x256xi32>
    %c32_i32 = arith.constant 32 : i32
    %24 = vector.broadcast %c32_i32 : i32 to vector<16x256xi32>
    %25 = arith.cmpi slt, %23, %24 : vector<16x256xi32>
    %c0_10 = arith.constant 0 : index
    %c0_11 = arith.constant 0 : index
    %26 = vector.load %arg2[%c0_10, %c0_11] : memref<64x256xf32, #tpu.memory_space<vmem>>, vector<64x256xf32>
    %cst_12 = arith.constant 0.000000e+00 : f32
    %27 = vector.broadcast %cst_12 : f32 to vector<16x64xf32>
    %cst_13 = arith.constant 0.000000e+00 : f32
    %28 = vector.broadcast %cst_13 : f32 to vector<16x64xf32>
    %cst_14 = arith.constant 0xFF800000 : f32
    %29 = vector.broadcast %cst_14 : f32 to vector<16x64xf32>
    %c0_15 = arith.constant 0 : index
    %c0_16 = arith.constant 0 : index
    %30 = vector.load %arg7[%c0_15, %c0_16] : memref<128x256xf32, #tpu.memory_space<vmem>>, vector<16x256xf32>
    %c112 = arith.constant 112 : index
    %c0_17 = arith.constant 0 : index
    %31 = vector.load %arg7[%c112, %c0_17] : memref<128x256xf32, #tpu.memory_space<vmem>>, vector<16x256xf32>
    %32 = arith.select %25, %30, %31 : vector<16x256xi1>, vector<16x256xf32>
    %cst_18 = arith.constant dense<0.000000e+00> : vector<16x256xf32>
    %33 = tpu.matmul %27, %26, %cst_18 {dimension_numbers = #tpu.dot_dimension_numbers<[1], [0], [0], [1], [0, 0, 1, 1], [], []>} : vector<16x64xf32>, vector<64x256xf32>, vector<16x256xf32> -> vector<16x256xf32>
    %34 = arith.addf %32, %33 : vector<16x256xf32>
    %35 = vector.extract_strided_slice %34 {offsets = [0, 0], sizes = [16, 64], strides = [1, 1]} : vector<16x256xf32> to vector<16x64xf32>
    %36 = arith.negf %35 : vector<16x64xf32>
    %37 = math.exp %36 : vector<16x64xf32>
    %cst_19 = arith.constant 1.000000e+00 : f32
    %38 = vector.broadcast %cst_19 : f32 to vector<16x64xf32>
    %39 = arith.addf %38, %37 : vector<16x64xf32>
    %40 = arith.divf %38, %39 : vector<16x64xf32>
    %41 = vector.extract_strided_slice %34 {offsets = [0, 64], sizes = [16, 64], strides = [1, 1]} : vector<16x256xf32> to vector<16x64xf32>
    %42 = arith.negf %41 : vector<16x64xf32>
    %43 = math.exp %42 : vector<16x64xf32>
    %cst_20 = arith.constant 1.000000e+00 : f32
    %44 = vector.broadcast %cst_20 : f32 to vector<16x64xf32>
    %45 = arith.addf %44, %43 : vector<16x64xf32>
    %46 = arith.divf %44, %45 : vector<16x64xf32>
    %47 = vector.extract_strided_slice %34 {offsets = [0, 128], sizes = [16, 64], strides = [1, 1]} : vector<16x256xf32> to vector<16x64xf32>
    %48 = math.tanh %47 : vector<16x64xf32>
    %49 = vector.extract_strided_slice %34 {offsets = [0, 192], sizes = [16, 64], strides = [1, 1]} : vector<16x256xf32> to vector<16x64xf32>
    %50 = arith.negf %49 : vector<16x64xf32>
    %51 = math.exp %50 : vector<16x64xf32>
    %cst_21 = arith.constant 1.000000e+00 : f32
    %52 = vector.broadcast %cst_21 : f32 to vector<16x64xf32>
    %53 = arith.addf %52, %51 : vector<16x64xf32>
    %54 = arith.divf %52, %53 : vector<16x64xf32>
    %55 = arith.mulf %46, %28 : vector<16x64xf32>
    %56 = arith.mulf %40, %48 : vector<16x64xf32>
    %57 = arith.addf %55, %56 : vector<16x64xf32>
    %58 = math.tanh %57 : vector<16x64xf32>
    %59 = arith.mulf %54, %58 : vector<16x64xf32>
    %60 = arith.maximumf %29, %59 : vector<16x64xf32>
    %c16 = arith.constant 16 : index
    %c0_22 = arith.constant 0 : index
    %61 = vector.load %arg7[%c16, %c0_22] : memref<128x256xf32, #tpu.memory_space<vmem>>, vector<16x256xf32>
    %c96 = arith.constant 96 : index
    %c0_23 = arith.constant 0 : index
    %62 = vector.load %arg7[%c96, %c0_23] : memref<128x256xf32, #tpu.memory_space<vmem>>, vector<16x256xf32>
    %63 = arith.select %25, %61, %62 : vector<16x256xi1>, vector<16x256xf32>
    %cst_24 = arith.constant dense<0.000000e+00> : vector<16x256xf32>
    %64 = tpu.matmul %59, %26, %cst_24 {dimension_numbers = #tpu.dot_dimension_numbers<[1], [0], [0], [1], [0, 0, 1, 1], [], []>} : vector<16x64xf32>, vector<64x256xf32>, vector<16x256xf32> -> vector<16x256xf32>
    %65 = arith.addf %63, %64 : vector<16x256xf32>
    %66 = vector.extract_strided_slice %65 {offsets = [0, 0], sizes = [16, 64], strides = [1, 1]} : vector<16x256xf32> to vector<16x64xf32>
    %67 = arith.negf %66 : vector<16x64xf32>
    %68 = math.exp %67 : vector<16x64xf32>
    %cst_25 = arith.constant 1.000000e+00 : f32
    %69 = vector.broadcast %cst_25 : f32 to vector<16x64xf32>
    %70 = arith.addf %69, %68 : vector<16x64xf32>
    %71 = arith.divf %69, %70 : vector<16x64xf32>
    %72 = vector.extract_strided_slice %65 {offsets = [0, 64], sizes = [16, 64], strides = [1, 1]} : vector<16x256xf32> to vector<16x64xf32>
    %73 = arith.negf %72 : vector<16x64xf32>
    %74 = math.exp %73 : vector<16x64xf32>
    %cst_26 = arith.constant 1.000000e+00 : f32
    %75 = vector.broadcast %cst_26 : f32 to vector<16x64xf32>
    %76 = arith.addf %75, %74 : vector<16x64xf32>
    %77 = arith.divf %75, %76 : vector<16x64xf32>
    %78 = vector.extract_strided_slice %65 {offsets = [0, 128], sizes = [16, 64], strides = [1, 1]} : vector<16x256xf32> to vector<16x64xf32>
    %79 = math.tanh %78 : vector<16x64xf32>
    %80 = vector.extract_strided_slice %65 {offsets = [0, 192], sizes = [16, 64], strides = [1, 1]} : vector<16x256xf32> to vector<16x64xf32>
    %81 = arith.negf %80 : vector<16x64xf32>
    %82 = math.exp %81 : vector<16x64xf32>
    %cst_27 = arith.constant 1.000000e+00 : f32
    %83 = vector.broadcast %cst_27 : f32 to vector<16x64xf32>
    %84 = arith.addf %83, %82 : vector<16x64xf32>
    %85 = arith.divf %83, %84 : vector<16x64xf32>
    %86 = arith.mulf %77, %57 : vector<16x64xf32>
    %87 = arith.mulf %71, %79 : vector<16x64xf32>
    %88 = arith.addf %86, %87 : vector<16x64xf32>
    %89 = math.tanh %88 : vector<16x64xf32>
    %90 = arith.mulf %85, %89 : vector<16x64xf32>
    %91 = arith.maximumf %60, %90 : vector<16x64xf32>
    %c32 = arith.constant 32 : index
    %c0_28 = arith.constant 0 : index
    %92 = vector.load %arg7[%c32, %c0_28] : memref<128x256xf32, #tpu.memory_space<vmem>>, vector<16x256xf32>
    %c80 = arith.constant 80 : index
    %c0_29 = arith.constant 0 : index
    %93 = vector.load %arg7[%c80, %c0_29] : memref<128x256xf32, #tpu.memory_space<vmem>>, vector<16x256xf32>
    %94 = arith.select %25, %92, %93 : vector<16x256xi1>, vector<16x256xf32>
    %cst_30 = arith.constant dense<0.000000e+00> : vector<16x256xf32>
    %95 = tpu.matmul %90, %26, %cst_30 {dimension_numbers = #tpu.dot_dimension_numbers<[1], [0], [0], [1], [0, 0, 1, 1], [], []>} : vector<16x64xf32>, vector<64x256xf32>, vector<16x256xf32> -> vector<16x256xf32>
    %96 = arith.addf %94, %95 : vector<16x256xf32>
    %97 = vector.extract_strided_slice %96 {offsets = [0, 0], sizes = [16, 64], strides = [1, 1]} : vector<16x256xf32> to vector<16x64xf32>
    %98 = arith.negf %97 : vector<16x64xf32>
    %99 = math.exp %98 : vector<16x64xf32>
    %cst_31 = arith.constant 1.000000e+00 : f32
    %100 = vector.broadcast %cst_31 : f32 to vector<16x64xf32>
    %101 = arith.addf %100, %99 : vector<16x64xf32>
    %102 = arith.divf %100, %101 : vector<16x64xf32>
    %103 = vector.extract_strided_slice %96 {offsets = [0, 64], sizes = [16, 64], strides = [1, 1]} : vector<16x256xf32> to vector<16x64xf32>
    %104 = arith.negf %103 : vector<16x64xf32>
    %105 = math.exp %104 : vector<16x64xf32>
    %cst_32 = arith.constant 1.000000e+00 : f32
    %106 = vector.broadcast %cst_32 : f32 to vector<16x64xf32>
    %107 = arith.addf %106, %105 : vector<16x64xf32>
    %108 = arith.divf %106, %107 : vector<16x64xf32>
    %109 = vector.extract_strided_slice %96 {offsets = [0, 128], sizes = [16, 64], strides = [1, 1]} : vector<16x256xf32> to vector<16x64xf32>
    %110 = math.tanh %109 : vector<16x64xf32>
    %111 = vector.extract_strided_slice %96 {offsets = [0, 192], sizes = [16, 64], strides = [1, 1]} : vector<16x256xf32> to vector<16x64xf32>
    %112 = arith.negf %111 : vector<16x64xf32>
    %113 = math.exp %112 : vector<16x64xf32>
    %cst_33 = arith.constant 1.000000e+00 : f32
    %114 = vector.broadcast %cst_33 : f32 to vector<16x64xf32>
    %115 = arith.addf %114, %113 : vector<16x64xf32>
    %116 = arith.divf %114, %115 : vector<16x64xf32>
    %117 = arith.mulf %108, %88 : vector<16x64xf32>
    %118 = arith.mulf %102, %110 : vector<16x64xf32>
    %119 = arith.addf %117, %118 : vector<16x64xf32>
    %120 = math.tanh %119 : vector<16x64xf32>
    %121 = arith.mulf %116, %120 : vector<16x64xf32>
    %122 = arith.maximumf %91, %121 : vector<16x64xf32>
    %c48 = arith.constant 48 : index
    %c0_34 = arith.constant 0 : index
    %123 = vector.load %arg7[%c48, %c0_34] : memref<128x256xf32, #tpu.memory_space<vmem>>, vector<16x256xf32>
    %c64 = arith.constant 64 : index
    %c0_35 = arith.constant 0 : index
    %124 = vector.load %arg7[%c64, %c0_35] : memref<128x256xf32, #tpu.memory_space<vmem>>, vector<16x256xf32>
    %125 = arith.select %25, %123, %124 : vector<16x256xi1>, vector<16x256xf32>
    %cst_36 = arith.constant dense<0.000000e+00> : vector<16x256xf32>
    %126 = tpu.matmul %121, %26, %cst_36 {dimension_numbers = #tpu.dot_dimension_numbers<[1], [0], [0], [1], [0, 0, 1, 1], [], []>} : vector<16x64xf32>, vector<64x256xf32>, vector<16x256xf32> -> vector<16x256xf32>
    %127 = arith.addf %125, %126 : vector<16x256xf32>
    %128 = vector.extract_strided_slice %127 {offsets = [0, 0], sizes = [16, 64], strides = [1, 1]} : vector<16x256xf32> to vector<16x64xf32>
    %129 = arith.negf %128 : vector<16x64xf32>
    %130 = math.exp %129 : vector<16x64xf32>
    %cst_37 = arith.constant 1.000000e+00 : f32
    %131 = vector.broadcast %cst_37 : f32 to vector<16x64xf32>
    %132 = arith.addf %131, %130 : vector<16x64xf32>
    %133 = arith.divf %131, %132 : vector<16x64xf32>
    %134 = vector.extract_strided_slice %127 {offsets = [0, 64], sizes = [16, 64], strides = [1, 1]} : vector<16x256xf32> to vector<16x64xf32>
    %135 = arith.negf %134 : vector<16x64xf32>
    %136 = math.exp %135 : vector<16x64xf32>
    %cst_38 = arith.constant 1.000000e+00 : f32
    %137 = vector.broadcast %cst_38 : f32 to vector<16x64xf32>
    %138 = arith.addf %137, %136 : vector<16x64xf32>
    %139 = arith.divf %137, %138 : vector<16x64xf32>
    %140 = vector.extract_strided_slice %127 {offsets = [0, 128], sizes = [16, 64], strides = [1, 1]} : vector<16x256xf32> to vector<16x64xf32>
    %141 = math.tanh %140 : vector<16x64xf32>
    %142 = vector.extract_strided_slice %127 {offsets = [0, 192], sizes = [16, 64], strides = [1, 1]} : vector<16x256xf32> to vector<16x64xf32>
    %143 = arith.negf %142 : vector<16x64xf32>
    %144 = math.exp %143 : vector<16x64xf32>
    %cst_39 = arith.constant 1.000000e+00 : f32
    %145 = vector.broadcast %cst_39 : f32 to vector<16x64xf32>
    %146 = arith.addf %145, %144 : vector<16x64xf32>
    %147 = arith.divf %145, %146 : vector<16x64xf32>
    %148 = arith.mulf %139, %119 : vector<16x64xf32>
    %149 = arith.mulf %133, %141 : vector<16x64xf32>
    %150 = arith.addf %148, %149 : vector<16x64xf32>
    %151 = math.tanh %150 : vector<16x64xf32>
    %152 = arith.mulf %147, %151 : vector<16x64xf32>
    %153 = arith.maximumf %122, %152 : vector<16x64xf32>
    %c64_40 = arith.constant 64 : index
    %c0_41 = arith.constant 0 : index
    %154 = vector.load %arg7[%c64_40, %c0_41] : memref<128x256xf32, #tpu.memory_space<vmem>>, vector<16x256xf32>
    %c48_42 = arith.constant 48 : index
    %c0_43 = arith.constant 0 : index
    %155 = vector.load %arg7[%c48_42, %c0_43] : memref<128x256xf32, #tpu.memory_space<vmem>>, vector<16x256xf32>
    %156 = arith.select %25, %154, %155 : vector<16x256xi1>, vector<16x256xf32>
    %cst_44 = arith.constant dense<0.000000e+00> : vector<16x256xf32>
    %157 = tpu.matmul %152, %26, %cst_44 {dimension_numbers = #tpu.dot_dimension_numbers<[1], [0], [0], [1], [0, 0, 1, 1], [], []>} : vector<16x64xf32>, vector<64x256xf32>, vector<16x256xf32> -> vector<16x256xf32>
    %158 = arith.addf %156, %157 : vector<16x256xf32>
    %159 = vector.extract_strided_slice %158 {offsets = [0, 0], sizes = [16, 64], strides = [1, 1]} : vector<16x256xf32> to vector<16x64xf32>
    %160 = arith.negf %159 : vector<16x64xf32>
    %161 = math.exp %160 : vector<16x64xf32>
    %cst_45 = arith.constant 1.000000e+00 : f32
    %162 = vector.broadcast %cst_45 : f32 to vector<16x64xf32>
    %163 = arith.addf %162, %161 : vector<16x64xf32>
    %164 = arith.divf %162, %163 : vector<16x64xf32>
    %165 = vector.extract_strided_slice %158 {offsets = [0, 64], sizes = [16, 64], strides = [1, 1]} : vector<16x256xf32> to vector<16x64xf32>
    %166 = arith.negf %165 : vector<16x64xf32>
    %167 = math.exp %166 : vector<16x64xf32>
    %cst_46 = arith.constant 1.000000e+00 : f32
    %168 = vector.broadcast %cst_46 : f32 to vector<16x64xf32>
    %169 = arith.addf %168, %167 : vector<16x64xf32>
    %170 = arith.divf %168, %169 : vector<16x64xf32>
    %171 = vector.extract_strided_slice %158 {offsets = [0, 128], sizes = [16, 64], strides = [1, 1]} : vector<16x256xf32> to vector<16x64xf32>
    %172 = math.tanh %171 : vector<16x64xf32>
    %173 = vector.extract_strided_slice %158 {offsets = [0, 192], sizes = [16, 64], strides = [1, 1]} : vector<16x256xf32> to vector<16x64xf32>
    %174 = arith.negf %173 : vector<16x64xf32>
    %175 = math.exp %174 : vector<16x64xf32>
    %cst_47 = arith.constant 1.000000e+00 : f32
    %176 = vector.broadcast %cst_47 : f32 to vector<16x64xf32>
    %177 = arith.addf %176, %175 : vector<16x64xf32>
    %178 = arith.divf %176, %177 : vector<16x64xf32>
    %179 = arith.mulf %170, %150 : vector<16x64xf32>
    %180 = arith.mulf %164, %172 : vector<16x64xf32>
    %181 = arith.addf %179, %180 : vector<16x64xf32>
    %182 = math.tanh %181 : vector<16x64xf32>
    %183 = arith.mulf %178, %182 : vector<16x64xf32>
    %184 = arith.maximumf %153, %183 : vector<16x64xf32>
    %c80_48 = arith.constant 80 : index
    %c0_49 = arith.constant 0 : index
    %185 = vector.load %arg7[%c80_48, %c0_49] : memref<128x256xf32, #tpu.memory_space<vmem>>, vector<16x256xf32>
    %c32_50 = arith.constant 32 : index
    %c0_51 = arith.constant 0 : index
    %186 = vector.load %arg7[%c32_50, %c0_51] : memref<128x256xf32, #tpu.memory_space<vmem>>, vector<16x256xf32>
    %187 = arith.select %25, %185, %186 : vector<16x256xi1>, vector<16x256xf32>
    %cst_52 = arith.constant dense<0.000000e+00> : vector<16x256xf32>
    %188 = tpu.matmul %183, %26, %cst_52 {dimension_numbers = #tpu.dot_dimension_numbers<[1], [0], [0], [1], [0, 0, 1, 1], [], []>} : vector<16x64xf32>, vector<64x256xf32>, vector<16x256xf32> -> vector<16x256xf32>
    %189 = arith.addf %187, %188 : vector<16x256xf32>
    %190 = vector.extract_strided_slice %189 {offsets = [0, 0], sizes = [16, 64], strides = [1, 1]} : vector<16x256xf32> to vector<16x64xf32>
    %191 = arith.negf %190 : vector<16x64xf32>
    %192 = math.exp %191 : vector<16x64xf32>
    %cst_53 = arith.constant 1.000000e+00 : f32
    %193 = vector.broadcast %cst_53 : f32 to vector<16x64xf32>
    %194 = arith.addf %193, %192 : vector<16x64xf32>
    %195 = arith.divf %193, %194 : vector<16x64xf32>
    %196 = vector.extract_strided_slice %189 {offsets = [0, 64], sizes = [16, 64], strides = [1, 1]} : vector<16x256xf32> to vector<16x64xf32>
    %197 = arith.negf %196 : vector<16x64xf32>
    %198 = math.exp %197 : vector<16x64xf32>
    %cst_54 = arith.constant 1.000000e+00 : f32
    %199 = vector.broadcast %cst_54 : f32 to vector<16x64xf32>
    %200 = arith.addf %199, %198 : vector<16x64xf32>
    %201 = arith.divf %199, %200 : vector<16x64xf32>
    %202 = vector.extract_strided_slice %189 {offsets = [0, 128], sizes = [16, 64], strides = [1, 1]} : vector<16x256xf32> to vector<16x64xf32>
    %203 = math.tanh %202 : vector<16x64xf32>
    %204 = vector.extract_strided_slice %189 {offsets = [0, 192], sizes = [16, 64], strides = [1, 1]} : vector<16x256xf32> to vector<16x64xf32>
    %205 = arith.negf %204 : vector<16x64xf32>
    %206 = math.exp %205 : vector<16x64xf32>
    %cst_55 = arith.constant 1.000000e+00 : f32
    %207 = vector.broadcast %cst_55 : f32 to vector<16x64xf32>
    %208 = arith.addf %207, %206 : vector<16x64xf32>
    %209 = arith.divf %207, %208 : vector<16x64xf32>
    %210 = arith.mulf %201, %181 : vector<16x64xf32>
    %211 = arith.mulf %195, %203 : vector<16x64xf32>
    %212 = arith.addf %210, %211 : vector<16x64xf32>
    %213 = math.tanh %212 : vector<16x64xf32>
    %214 = arith.mulf %209, %213 : vector<16x64xf32>
    %215 = arith.maximumf %184, %214 : vector<16x64xf32>
    %c96_56 = arith.constant 96 : index
    %c0_57 = arith.constant 0 : index
    %216 = vector.load %arg7[%c96_56, %c0_57] : memref<128x256xf32, #tpu.memory_space<vmem>>, vector<16x256xf32>
    %c16_58 = arith.constant 16 : index
    %c0_59 = arith.constant 0 : index
    %217 = vector.load %arg7[%c16_58, %c0_59] : memref<128x256xf32, #tpu.memory_space<vmem>>, vector<16x256xf32>
    %218 = arith.select %25, %216, %217 : vector<16x256xi1>, vector<16x256xf32>
    %cst_60 = arith.constant dense<0.000000e+00> : vector<16x256xf32>
    %219 = tpu.matmul %214, %26, %cst_60 {dimension_numbers = #tpu.dot_dimension_numbers<[1], [0], [0], [1], [0, 0, 1, 1], [], []>} : vector<16x64xf32>, vector<64x256xf32>, vector<16x256xf32> -> vector<16x256xf32>
    %220 = arith.addf %218, %219 : vector<16x256xf32>
    %221 = vector.extract_strided_slice %220 {offsets = [0, 0], sizes = [16, 64], strides = [1, 1]} : vector<16x256xf32> to vector<16x64xf32>
    %222 = arith.negf %221 : vector<16x64xf32>
    %223 = math.exp %222 : vector<16x64xf32>
    %cst_61 = arith.constant 1.000000e+00 : f32
    %224 = vector.broadcast %cst_61 : f32 to vector<16x64xf32>
    %225 = arith.addf %224, %223 : vector<16x64xf32>
    %226 = arith.divf %224, %225 : vector<16x64xf32>
    %227 = vector.extract_strided_slice %220 {offsets = [0, 64], sizes = [16, 64], strides = [1, 1]} : vector<16x256xf32> to vector<16x64xf32>
    %228 = arith.negf %227 : vector<16x64xf32>
    %229 = math.exp %228 : vector<16x64xf32>
    %cst_62 = arith.constant 1.000000e+00 : f32
    %230 = vector.broadcast %cst_62 : f32 to vector<16x64xf32>
    %231 = arith.addf %230, %229 : vector<16x64xf32>
    %232 = arith.divf %230, %231 : vector<16x64xf32>
    %233 = vector.extract_strided_slice %220 {offsets = [0, 128], sizes = [16, 64], strides = [1, 1]} : vector<16x256xf32> to vector<16x64xf32>
    %234 = math.tanh %233 : vector<16x64xf32>
    %235 = vector.extract_strided_slice %220 {offsets = [0, 192], sizes = [16, 64], strides = [1, 1]} : vector<16x256xf32> to vector<16x64xf32>
    %236 = arith.negf %235 : vector<16x64xf32>
    %237 = math.exp %236 : vector<16x64xf32>
    %cst_63 = arith.constant 1.000000e+00 : f32
    %238 = vector.broadcast %cst_63 : f32 to vector<16x64xf32>
    %239 = arith.addf %238, %237 : vector<16x64xf32>
    %240 = arith.divf %238, %239 : vector<16x64xf32>
    %241 = arith.mulf %232, %212 : vector<16x64xf32>
    %242 = arith.mulf %226, %234 : vector<16x64xf32>
    %243 = arith.addf %241, %242 : vector<16x64xf32>
    %244 = math.tanh %243 : vector<16x64xf32>
    %245 = arith.mulf %240, %244 : vector<16x64xf32>
    %246 = arith.maximumf %215, %245 : vector<16x64xf32>
    %c112_64 = arith.constant 112 : index
    %c0_65 = arith.constant 0 : index
    %247 = vector.load %arg7[%c112_64, %c0_65] : memref<128x256xf32, #tpu.memory_space<vmem>>, vector<16x256xf32>
    %c0_66 = arith.constant 0 : index
    %c0_67 = arith.constant 0 : index
    %248 = vector.load %arg7[%c0_66, %c0_67] : memref<128x256xf32, #tpu.memory_space<vmem>>, vector<16x256xf32>
    %249 = arith.select %25, %247, %248 : vector<16x256xi1>, vector<16x256xf32>
    %cst_68 = arith.constant dense<0.000000e+00> : vector<16x256xf32>
    %250 = tpu.matmul %245, %26, %cst_68 {dimension_numbers = #tpu.dot_dimension_numbers<[1], [0], [0], [1], [0, 0, 1, 1], [], []>} : vector<16x64xf32>, vector<64x256xf32>, vector<16x256xf32> -> vector<16x256xf32>
    %251 = arith.addf %249, %250 : vector<16x256xf32>
    %252 = vector.extract_strided_slice %251 {offsets = [0, 0], sizes = [16, 64], strides = [1, 1]} : vector<16x256xf32> to vector<16x64xf32>
    %253 = arith.negf %252 : vector<16x64xf32>
    %254 = math.exp %253 : vector<16x64xf32>
    %cst_69 = arith.constant 1.000000e+00 : f32
    %255 = vector.broadcast %cst_69 : f32 to vector<16x64xf32>
    %256 = arith.addf %255, %254 : vector<16x64xf32>
    %257 = arith.divf %255, %256 : vector<16x64xf32>
    %258 = vector.extract_strided_slice %251 {offsets = [0, 64], sizes = [16, 64], strides = [1, 1]} : vector<16x256xf32> to vector<16x64xf32>
    %259 = arith.negf %258 : vector<16x64xf32>
    %260 = math.exp %259 : vector<16x64xf32>
    %cst_70 = arith.constant 1.000000e+00 : f32
    %261 = vector.broadcast %cst_70 : f32 to vector<16x64xf32>
    %262 = arith.addf %261, %260 : vector<16x64xf32>
    %263 = arith.divf %261, %262 : vector<16x64xf32>
    %264 = vector.extract_strided_slice %251 {offsets = [0, 128], sizes = [16, 64], strides = [1, 1]} : vector<16x256xf32> to vector<16x64xf32>
    %265 = math.tanh %264 : vector<16x64xf32>
    %266 = vector.extract_strided_slice %251 {offsets = [0, 192], sizes = [16, 64], strides = [1, 1]} : vector<16x256xf32> to vector<16x64xf32>
    %267 = arith.negf %266 : vector<16x64xf32>
    %268 = math.exp %267 : vector<16x64xf32>
    %cst_71 = arith.constant 1.000000e+00 : f32
    %269 = vector.broadcast %cst_71 : f32 to vector<16x64xf32>
    %270 = arith.addf %269, %268 : vector<16x64xf32>
    %271 = arith.divf %269, %270 : vector<16x64xf32>
    %272 = arith.mulf %263, %243 : vector<16x64xf32>
    %273 = arith.mulf %257, %265 : vector<16x64xf32>
    %274 = arith.addf %272, %273 : vector<16x64xf32>
    %275 = math.tanh %274 : vector<16x64xf32>
    %276 = arith.mulf %271, %275 : vector<16x64xf32>
    %277 = arith.maximumf %246, %276 : vector<16x64xf32>
    %278 = vector.extract_strided_slice %277 {offsets = [0, 0], sizes = [8, 64], strides = [1, 1]} : vector<16x64xf32> to vector<8x64xf32>
    %279 = vector.extract_strided_slice %277 {offsets = [8, 0], sizes = [8, 64], strides = [1, 1]} : vector<16x64xf32> to vector<8x64xf32>
    %280 = arith.subf %278, %279 : vector<8x64xf32>
    %281 = math.absf %280 : vector<8x64xf32>
    %c0_72 = arith.constant 0 : index
    %c0_73 = arith.constant 0 : index
    %282 = vector.load %arg4[%c0_72, %c0_73] : memref<64x2xf32, #tpu.memory_space<vmem>>, vector<64x2xf32>
    %cst_74 = arith.constant dense<0.000000e+00> : vector<8x2xf32>
    %283 = tpu.matmul %281, %282, %cst_74 {dimension_numbers = #tpu.dot_dimension_numbers<[1], [0], [0], [1], [0, 0, 1, 1], [], []>} : vector<8x64xf32>, vector<64x2xf32>, vector<8x2xf32> -> vector<8x2xf32>
    %c0_75 = arith.constant 0 : index
    %c0_76 = arith.constant 0 : index
    %284 = vector.load %arg5[%c0_75, %c0_76] : memref<1x2xf32, #tpu.memory_space<vmem>>, vector<1x2xf32>
    %285 = vector.broadcast %284 : vector<1x2xf32> to vector<8x2xf32>
    %286 = arith.addf %283, %285 : vector<8x2xf32>
    %cst_77 = arith.constant dense<0xFF800000> : vector<8xf32>
    %287 = vector.multi_reduction <maximumf>, %286, %cst_77 [1] : vector<8x2xf32> to vector<8xf32>
    %288 = vector.shape_cast %287 : vector<8xf32> to vector<8x1xf32>
    %289 = vector.broadcast %288 : vector<8x1xf32> to vector<8x2xf32>
    %290 = arith.subf %286, %289 : vector<8x2xf32>
    %291 = math.exp %290 : vector<8x2xf32>
    %cst_78 = arith.constant dense<0.000000e+00> : vector<8xf32>
    %292 = vector.multi_reduction <add>, %291, %cst_78 [1] : vector<8x2xf32> to vector<8xf32>
    %293 = vector.shape_cast %292 : vector<8xf32> to vector<8x1xf32>
    %294 = math.log %293 : vector<8x1xf32>
    %295 = arith.addf %294, %288 : vector<8x1xf32>
    %296 = vector.broadcast %295 : vector<8x1xf32> to vector<8x2xf32>
    %297 = arith.subf %286, %296 : vector<8x2xf32>
    %c0_79 = arith.constant 0 : index
    %c0_80 = arith.constant 0 : index
    %298 = vector.load %arg6[%c0_79, %c0_80] : memref<8x2xf32, #tpu.memory_space<vmem>>, vector<8x2xf32>
    tpu.vector_store %arg6[%c0_79, %c0_80], %297 {strides = array<i32>} : memref<8x2xf32, #tpu.memory_space<vmem>>, vector<8x2xf32>,
    return
  }
}

</mosaic_0001>

<bundles_post_ra>
// kernel: model_forward.1
= control target key start
LH: loop header
LB: loop body
LE: loop exit
PB: predicated region body
PF: predicated region fallthrough
CT: control target
= control target key end

     0   :  { %v2927_v3 = vmov 0.0   ;;  %vm59_vm0 = vcmask 261120   ;;  %v49_v41 = vlaneseq  ;;  %vm358_vm3 = vcmask 523264   ;;  %s2920_s1 = inlined_call_operand.vmem [shape: f32[32,256], index: 1, kind: input, shape index: {}]   ;;  %s2921_s0 = inlined_call_operand.vmem [shape: f32[128,32], index: 0, kind: input, shape index: {}]   ;;  %s2922_s2 = inlined_call_operand.vmem [shape: f32[64,256], index: 2, kind: input, shape index: {}]   ;;  %s2923_s3 = inlined_call_operand.vmem [shape: f32[1,256], index: 3, kind: input, shape index: {}]   ;;  %s2924_s4 = inlined_call_operand.vmem [shape: f32[64,2], index: 4, kind: input, shape index: {}]   ;;  %s2925_s5 = inlined_call_operand.vmem [shape: f32[1,2], index: 5, kind: input, shape index: {}]   ;;  %s2926_s6 = inlined_call_operand.vmem [shape: f32[8,2], index: 6, kind: output, shape index: {}]  }
   0x1   :  { %v46_v0 = vld [vmem:[%s2920_s1 + $0x38] sm:$0xff]  ;;  %v45_v1 = vld [vmem:[%s2920_s1 + $0x30] sm:$0xff]  ;;  %v44_v2 = vld [vmem:[%s2920_s1 + $0x28] sm:$0xff]  ;;  %172 = vmatprep.mubr.f32.mxu0 %v2927_v3  ;;  %426 = vmatprep.mubr.f32.mxu1 %v2927_v3  ;;  %vm1917_vm4 = vmmov 0   ;;  %vm1590_vm5 = vcmask 15360  }
   0x2   :  { %132 = vmatprep.subr.mxu0 %v46_v0  ;;  %v43_v4 = vld [vmem:[%s2920_s1 + $0x20] sm:$0xff]  ;;  %v42_v5 = vld [vmem:[%s2920_s1 + $0x18] sm:$0xff]  ;;  %v41_v6 = vld [vmem:[%s2920_s1 + $0x10] sm:$0xff]  ;;  %v50_v42 = vshrl.u32 %v49_v41, 7 }
   0x3   :  { %133 = vmatpush1.msra.mxu0 %v45_v1  ;;  %v40_v7 = vld [vmem:[%s2920_s1 + $0x8] sm:$0xff]  ;;  %v39_v8 = vld [vmem:[%s2920_s1] sm:$0xff]  ;;  %v1985_v10 = vld [vmem:[%s2922_s2 + $0x78] sm:$0xff] }
   0x4   :  { %134 = vmatprep.subr.mxu0 %v44_v2  ;;  %v23_v9 = vld [vmem:[%s2921_s0] sm:$0xff]  ;;  %v1990_v11 = vld [vmem:[%s2922_s2 + $0x70] sm:$0xff]  ;;  %378 = vmatprep.subr.mxu1 %v1985_v10  ;;  %v1996_v12 = vld [vmem:[%s2922_s2 + $0x68] sm:$0xff]  ;;  %v51_v45 = vsub.s32 0, %v50_v42  ;;  %v55_v48 = vsub.s32 1, %v50_v42 }
   0x5   :  { %135 = vmatpush1.msra.mxu0 %v43_v4  ;;  %v2001_v13 = vld [vmem:[%s2922_s2 + $0x60] sm:$0xff]  ;;  %379 = vmatpush1.msra.mxu1 %v1990_v11  ;;  %v2007_v14 = vld [vmem:[%s2922_s2 + $0x58] sm:$0xff]  ;;  %v2014_v15 = vld [vmem:[%s2922_s2 + $0x50] sm:$0xff]  ;;  %v302_v4 = vand.u32 127, %v49_v41 }
   0x6   :  { %136 = vmatprep.subr.mxu0 %v42_v5  ;;  %380 = vmatprep.subr.mxu1 %v1996_v12  ;;  %v24_v16 = vld [vmem:[%s2921_s0 + $0x8] sm:$0xff]  ;;  %v2030_v18 = vld [vmem:[%s2922_s2 + $0x40] sm:$0xff]  ;;  %v2037_v19 = vld [vmem:[%s2922_s2 + $0x38] sm:$0xff] }
   0x7   :  { %137 = vmatpush1.msra.mxu0 %v41_v6  ;;  %381 = vmatpush1.msra.mxu1 %v2001_v13  ;;  %v2024_v17 = vld [vmem:[%s2922_s2 + $0x48] sm:$0xff]  ;;  %v2045_v20 = vld [vmem:[%s2922_s2 + $0x30] sm:$0xff]  ;;  %v2061_v23 = vld [vmem:[%s2922_s2 + $0x20] sm:$0xff] }
   0x8   :  { %138 = vmatprep.subr.mxu0 %v40_v7  ;;  %382 = vmatprep.subr.mxu1 %v2007_v14  ;;  %v25_v21 = vld [vmem:[%s2921_s0 + $0x10] sm:$0xff]  ;;  %v2055_v22 = vld [vmem:[%s2922_s2 + $0x28] sm:$0xff]  ;;  %v2068_v24 = vld [vmem:[%s2922_s2 + $0x18] sm:$0xff] }
   0x9   :  { %139 = vmatpush1.msra.mxu0 %v39_v8  ;;  %383 = vmatpush1.msra.mxu1 %v2014_v15  ;;  %v2076_v25 = vld [vmem:[%s2922_s2 + $0x10] sm:$0xff]  ;;  %v26_v26 = vld [vmem:[%s2921_s0 + $0x18] sm:$0xff]  ;;  %v2086_v27 = vld [vmem:[%s2922_s2 + $0x8] sm:$0xff] }
   0xa   :  { %1609 = vmatmul.mubr.msk.f32.vlgmr.msra.gmra.mxu0 %vm59_vm0, %v23_v9  ;;  %964 = vmatprep.subr.mxu0 %v1985_v10  ;;  %v2092_v28 = vld [vmem:[%s2922_s2] sm:$0xff]  ;;  %v28_v30 = vld [vmem:[%s2921_s0 + $0x28] sm:$0xff]  ;;  %v29_v31 = vld [vmem:[%s2921_s0 + $0x30] sm:$0xff]  ;;  %v303_v9 = vadd.s32 128, %v302_v4 }
   0xb   :  { %178 = vmatprep.mubr.f32.mxu0 %v2927_v3  ;;  %965 = vmatpush1.msra.mxu0 %v1990_v11  ;;  %v27_v29 = vld [vmem:[%s2921_s0 + $0x20] sm:$0xff]  ;;  %v30_v32 = vld [vmem:[%s2921_s0 + $0x38] sm:$0xff]  ;;  %v32_v34 = vld [vmem:[%s2921_s0 + $0x48] sm:$0xff] }
   0xc   :  { %384 = vmatprep.subr.mxu1 %v2024_v17  ;;  %966 = vmatprep.subr.mxu0 %v1996_v12  ;;  %v31_v33 = vld [vmem:[%s2921_s0 + $0x40] sm:$0xff]  ;;  %v33_v35 = vld [vmem:[%s2921_s0 + $0x50] sm:$0xff]  ;;  %v34_v36 = vld [vmem:[%s2921_s0 + $0x58] sm:$0xff] }
   0xd   :  { %385 = vmatpush1.msra.mxu1 %v2030_v18  ;;  %967 = vmatpush1.msra.mxu0 %v2001_v13  ;;  %v35_v37 = vld [vmem:[%s2921_s0 + $0x60] sm:$0xff]  ;;  %v36_v38 = vld [vmem:[%s2921_s0 + $0x68] sm:$0xff]  ;;  %v37_v39 = vld [vmem:[%s2921_s0 + $0x70] sm:$0xff] }
   0xe   :  { %1610 = vmatmul.mubr.msk.f32.gmra.mxu0 %vm59_vm0, %v24_v16  ;;  %386 = vmatprep.subr.mxu1 %v2037_v19  ;;  %v38_v40 = vld [vmem:[%s2921_s0 + $0x78] sm:$0xff]  ;;  %v47_v46 = vld [vmem:[%s2923_s3] sm:$0x3]  ;;  %s1916_s0 = smov 64  }
   0xf   :  { %184 = vmatprep.mubr.f32.mxu0 %v2927_v3  ;;  %387 = vmatpush1.msra.mxu1 %v2045_v20  ;;  %v2204_v50 = vrot.slane %v47_v46, %v51_v45  ;;  %v2206_v52 = vrot.slane %v47_v46, %v55_v48 }
  0x10   :  { %388 = vmatprep.subr.mxu1 %v2055_v22  ;;  %968 = vmatprep.subr.mxu0 %v2007_v14 }
  0x11   :  { %389 = vmatpush1.msra.mxu1 %v2061_v23  ;;  %969 = vmatpush1.msra.mxu0 %v2014_v15 }
  0x12   :  { %1611 = vmatmul.mubr.msk.f32.gmra.mxu0 %vm59_vm0, %v25_v21  ;;  %390 = vmatprep.subr.mxu1 %v2068_v24 }
  0x13   :  { %190 = vmatprep.mubr.f32.mxu0 %v2927_v3  ;;  %391 = vmatpush1.msra.mxu1 %v2076_v25 }
  0x14   :  { %392 = vmatprep.subr.mxu1 %v2086_v27  ;;  %970 = vmatprep.subr.mxu0 %v2024_v17 }
  0x15   :  { %393 = vmatpush1.msra.mxu1 %v2092_v28  ;;  %971 = vmatpush1.msra.mxu0 %v2030_v18 }
  0x16   :  { %1612 = vmatmul.mubr.msk.f32.gmra.mxu0 %vm59_vm0, %v26_v26  ;;  %427 = vmatmul.mubr.f32.vlgmr.msra.gmra.mxu1 %v2927_v3  ;;  %v308_v26 = vand.u32 63, %v302_v4 }
  0x17   :  { %196 = vmatprep.mubr.f32.mxu0 %v2927_v3  ;;  %525 = vmatprep.subr.mxu1 %v1985_v10 }
  0x18   :  { %432 = vmatprep.mubr.f32.mxu1 %v2927_v3  ;;  %526 = vmatpush1.msra.mxu1 %v1990_v11  ;;  %vm2244_vm1 = vcmp.lt.s32.totalorder %v308_v26, 32 }
  0x19   :  { %527 = vmatprep.subr.mxu1 %v1996_v12  ;;  %972 = vmatprep.subr.mxu0 %v2037_v19 }
  0x1a   :  { %1613 = vmatmul.mubr.msk.f32.gmra.mxu0 %vm59_vm0, %v27_v29  ;;  %528 = vmatpush1.msra.mxu1 %v2001_v13 }
  0x1b   :  { %202 = vmatprep.mubr.f32.mxu0 %v2927_v3  ;;  %433 = vmatmul.mubr.f32.gmra.mxu1 %v2927_v3 }
  0x1c   :  { %529 = vmatprep.subr.mxu1 %v2007_v14  ;;  %573 = vmatprep.mubr.f32.mxu1 %v2927_v3 }
  0x1d   :  { %530 = vmatpush1.msra.mxu1 %v2014_v15  ;;  %973 = vmatpush1.msra.mxu0 %v2045_v20 }
  0x1e   :  { %1614 = vmatmul.mubr.msk.f32.gmra.mxu0 %vm59_vm0, %v28_v30  ;;  %531 = vmatprep.subr.mxu1 %v2024_v17 }
  0x1f   :  { %208 = vmatprep.mubr.f32.mxu0 %v2927_v3  ;;  %532 = vmatpush1.msra.mxu1 %v2030_v18 }
  0x20   :  { %533 = vmatprep.subr.mxu1 %v2037_v19  ;;  %974 = vmatprep.subr.mxu0 %v2055_v22 }
  0x21   :  { %534 = vmatpush1.msra.mxu1 %v2045_v20  ;;  %975 = vmatpush1.msra.mxu0 %v2061_v23 }
  0x22   :  { %1615 = vmatmul.mubr.msk.f32.gmra.mxu0 %vm59_vm0, %v29_v31  ;;  %535 = vmatprep.subr.mxu1 %v2055_v22  ;;  %v315_v31 = vand.u32 63, %v303_v9 }
  0x23   :  { %214 = vmatprep.mubr.f32.mxu0 %v2927_v3  ;;  %536 = vmatpush1.msra.mxu1 %v2061_v23 }
  0x24   :  { %537 = vmatprep.subr.mxu1 %v2068_v24  ;;  %976 = vmatprep.subr.mxu0 %v2068_v24  ;;  %vm2251_vm2 = vcmp.lt.s32.totalorder %v315_v31, 32 }
  0x25   :  { %538 = vmatpush1.msra.mxu1 %v2076_v25  ;;  %977 = vmatpush1.msra.mxu0 %v2076_v25 }
  0x26   :  { %1616 = vmatmul.mubr.msk.f32.gmra.mxu0 %vm59_vm0, %v30_v32  ;;  %539 = vmatprep.subr.mxu1 %v2086_v27 }
  0x27   :  { %220 = vmatprep.mubr.f32.mxu0 %v2927_v3  ;;  %540 = vmatpush1.msra.mxu1 %v2092_v28 }
  0x28   :  { %674 = vmatprep.subr.mxu1 %v1985_v10  ;;  %978 = vmatprep.subr.mxu0 %v2086_v27 }
  0x29   :  { %979 = vmatpush1.msra.mxu0 %v2092_v28 }
  0x2a   :  { %1617 = vmatmul.mubr.msk.f32.gmra.mxu0 %vm59_vm0, %v31_v33  ;;  %1246 = vmatprep.subr.mxu0 %v1985_v10 }
  0x2b   :  { %226 = vmatprep.mubr.f32.mxu0 %v2927_v3 }
  0x2e   :  { %1618 = vmatmul.mubr.msk.f32.gmra.mxu0 %vm59_vm0, %v32_v34 }
  0x2f   :  { %232 = vmatprep.mubr.f32.mxu0 %v2927_v3 }
  0x32   :  { %1619 = vmatmul.mubr.msk.f32.gmra.mxu0 %vm59_vm0, %v33_v35 }
  0x33   :  { %238 = vmatprep.mubr.f32.mxu0 %v2927_v3 }
  0x36   :  { %1620 = vmatmul.mubr.msk.f32.gmra.mxu0 %vm59_vm0, %v34_v36 }
  0x37   :  { %244 = vmatprep.mubr.f32.mxu0 %v2927_v3 }
  0x3a   :  { %1621 = vmatmul.mubr.msk.f32.gmra.mxu0 %vm59_vm0, %v35_v37  ;;  %v1507_v37 = vld [vmem:[%s2924_s4 + $0x38] sm:$0xff] }
  0x3b   :  { %250 = vmatprep.mubr.f32.mxu0 %v2927_v3 }
  0x3e   :  { %1622 = vmatmul.mubr.msk.f32.gmra.mxu0 %vm59_vm0, %v36_v38 }
  0x3f   :  { %256 = vmatprep.mubr.f32.mxu0 %v2927_v3 }
  0x42   :  { %1623 = vmatmul.mubr.msk.f32.gmra.mxu0 %vm59_vm0, %v37_v39 }
  0x43   :  { %262 = vmatprep.mubr.f32.mxu0 %v2927_v3 }
  0x46   :  { %1624 = vmatmul.mubr.msk.f32.gmra.mxu0 %vm59_vm0, %v38_v40 }
  0x47   :  { %1012 = vmatprep.mubr.f32.mxu0 %v2927_v3 }
  0xca   :  { %v2193_v43 = vpop.f32.mrf.mxu0 }
  0xcb   :  { %v2378_v45 = vadd.f32 %v2193_v43, %v2204_v50 }
  0xcc   :  { %v2195_v44 = vpop.f32.mrf.mxu0 }
  0xcd   :  { %2943 = vst [vmem:[#allocation4_spill] sm:$0xff] %v2378_v45 }
  0xce   :  { %v2200_v47 = vpop.f32.mrf.mxu0 }
  0xd0   :  { %v2202_v49 = vpop.f32.mrf.mxu0 }
  0xd2   :  { %v186_v51 = vpop.f32.mrf.mxu0 }
  0xd3   :  { %v2209_v53 = vadd.f32 %v186_v51, %v2204_v50 }
  0xd4   :  { %v188_v54 = vpop.f32.mrf.mxu0 }
  0xd5   :  { %v2212_v55 = vadd.f32 %v188_v54, %v2206_v52 }
  0xd6   :  { %v192_v56 = vpop.f32.mrf.mxu0  ;;  %v428_v40 = vpop.f32.mrf.mxu1 }
  0xd7   :  { %v2215_v57 = vadd.f32 %v192_v56, %v2204_v50 }
  0xd8   :  { %v194_v58 = vpop.f32.mrf.mxu0 }
  0xd9   :  { %v2218_v59 = vadd.f32 %v194_v58, %v2206_v52 }
  0xda   :  { %v198_v60 = vpop.f32.mrf.mxu0 }
  0xdb   :  { %2938 = vst [vmem:[#allocation3_spill] sm:$0xff] %v2218_v59  ;;  %v2221_v61 = vadd.f32 %v198_v60, %v2204_v50 }
  0xdc   :  { %v200_v62 = vpop.f32.mrf.mxu0 }
  0xdd   :  { %v2224_v63 = vadd.f32 %v200_v62, %v2206_v52 }
  0xde   :  { %v204_v0 = vpop.f32.mrf.mxu0 }
  0xdf   :  { %v2227_v1 = vadd.f32 %v204_v0, %v2204_v50 }
  0xe0   :  { %v206_v2 = vpop.f32.mrf.mxu0 }
  0xe1   :  { %v2230_v5 = vadd.f32 %v206_v2, %v2206_v52 }
  0xe2   :  { %v210_v6 = vpop.f32.mrf.mxu0 }
  0xe3   :  { %v2233_v7 = vadd.f32 %v210_v6, %v2204_v50 }
  0xe4   :  { %v212_v8 = vpop.f32.mrf.mxu0 }
  0xe5   :  { %v2236_v16 = vadd.f32 %v212_v8, %v2206_v52 }
  0xe6   :  { %v216_v21 = vpop.f32.mrf.mxu0 }
  0xe7   :  { %v2239_v29 = vadd.f32 %v216_v21, %v2204_v50 }
  0xe8   :  { %v218_v30 = vpop.f32.mrf.mxu0 }
  0xe9   :  { %v2242_v32 = vadd.f32 %v218_v30, %v2206_v52 }
  0xea   :  { %v222_v33 = vpop.f32.mrf.mxu0 }
  0xeb   :  { %v2249_v35 = vadd.f32 %v222_v33, %v2204_v50 }
  0xec   :  { %v224_v36 = vpop.f32.mrf.mxu0 }
  0xed   :  { %v2256_v38 = vadd.f32 %v224_v36, %v2206_v52 }
  0xee   :  { %v228_v41 = vpop.f32.mrf.mxu0 }
  0xef   :  { %v2267_v42 = vadd.f32 %v228_v41, %v2204_v50  ;;  %v2393_v41 = vadd.f32 %v2195_v44, %v2206_v52  ;;  %v2408_v44 = vadd.f32 %v2200_v47, %v2204_v50 }
  0xf0   :  { %v230_v48 = vpop.f32.mrf.mxu0 }
  0xf1   :  { %v2278_v51 = vadd.f32 %v230_v48, %v2206_v52  ;;  %2945 = vst [vmem:[#allocation6_spill] sm:$0xff] %v2393_v41  ;;  %2947 = vst [vmem:[#allocation8_spill] sm:$0xff] %v2408_v44 }
  0xf2   :  { %v234_v58 = vpop.f32.mrf.mxu0 }
  0xf3   :  { %v2289_v60 = vadd.f32 %v234_v58, %v2204_v50 }
  0xf4   :  { %v236_v2 = vpop.f32.mrf.mxu0 }
  0xf5   :  { %v2300_v4 = vadd.f32 %v236_v2, %v2206_v52  ;;  %v430_v2 = vpop.f32.mrf.mxu1 }
  0xf6   :  { %v240_v9 = vpop.f32.mrf.mxu0 }
  0xf7   :  { %v2311_v21 = vadd.f32 %v240_v9, %v2204_v50 }
  0xf8   :  { %v242_v31 = vpop.f32.mrf.mxu0 }
  0xf9   :  { %v2322_v33 = vadd.f32 %v242_v31, %v2206_v52 }
  0xfa   :  { %v246_v48 = vpop.f32.mrf.mxu0 }
  0xfb   :  { %v2333_v58 = vadd.f32 %v246_v48, %v2204_v50 }
  0xfc   :  { %v248_v31 = vpop.f32.mrf.mxu0 }
  0xfd   :  { %v2344_v30 = vadd.f32 %v248_v31, %v2206_v52 }
  0xfe   :  { %v252_v8 = vpop.f32.mrf.mxu0 }
  0xff   :  { %v2355_v0 = vadd.f32 %v252_v8, %v2204_v50  ;;  %v2419_v8 = vadd.f32 %v2202_v49, %v2206_v52 }
 0x100   :  { %v254_v46 = vpop.f32.mrf.mxu0 }
 0x101   :  { %v2366_v56 = vadd.f32 %v254_v46, %v2206_v52  ;;  %2949 = vst [vmem:[#allocation10_spill] sm:$0xff] %v2419_v8 }
 0x102   :  { %v258_v62 = vpop.f32.mrf.mxu0 }
 0x103   :  { %v2381_v9 = vadd.f32 %v258_v62, %v2204_v50 }
 0x104   :  { %v260_v39 = vpop.f32.mrf.mxu0 }
 0x105   :  { %2944 = vst [vmem:[#allocation5_spill] sm:$0xff] %v2381_v9  ;;  %v354_v43 = vsel %vm2244_vm1, %v2378_v45, %v2381_v9  ;;  %v2400_v62 = vadd.f32 %v260_v39, %v2206_v52 }
 0x106   :  { %v439_v54 = vadd.f32 %v428_v40, %v354_v43  ;;  %v264_v36 = vpop.f32.mrf.mxu0  ;;  %v434_v40 = vpop.f32.mrf.mxu1 }
 0x107   :  { %2946 = vst [vmem:[#allocation7_spill] sm:$0xff] %v2400_v62  ;;  %v2411_v6 = vadd.f32 %v264_v36, %v2204_v50 }
 0x108   :  { %v1625_v46 = vmul.f32 -1.442695, %v439_v54  ;;  %v266_v31 = vpop.f32.mrf.mxu0  ;;  %v2987_v34 = vld [vmem:[#allocation10_spill] sm:$0xff] }
 0x109   :  { %2948 = vst [vmem:[#allocation9_spill] sm:$0xff] %v2411_v6  ;;  %v356_v47 = vsel %vm2244_vm1, %v2408_v44, %v2411_v6  ;;  %v2426_v50 = vadd.f32 %v266_v31, %v2206_v52  ;;  %v355_v52 = vsel %vm2251_vm2, %v2393_v41, %v2400_v62 }
 0x10a   :  { %1704 = vpow2.f32 %v1625_v46  ;;  %v441_v54 = vadd.f32 %v434_v40, %v356_v47  ;;  %v440_v31 = vadd.f32 %v430_v2, %v355_v52  ;;  %v436_v40 = vpop.f32.mrf.mxu1 }
 0x10b   :  { %2950 = vst [vmem:[#allocation11_spill] sm:$0xff] %v2426_v50  ;;  %v357_v39 = vsel %vm2251_vm2, %v2419_v8, %v2426_v50 }
 0x10c   :  { %v1626_v43 = vmul.f32 -1.442695, %v441_v54  ;;  %v442_v36 = vadd.f32 %v436_v40, %v357_v39 }
 0x10e   :  { %1706 = vpow2.f32 %v1626_v43  ;;  %v1628_v8 = vmul.f32 -1.442695, %v442_v36 }
 0x10f   :  { %1708 = vtanh.f32 %v440_v31 }
 0x117   :  { %v1705_v46 = vpop.eup %1704 }
 0x118   :  { %v449_v47 = vadd.f32 1.0, %v1705_v46  ;;  %v1627_v46 = vmul.f32 -1.442695, %v440_v31 }
 0x11a   :  { %1710 = vrcp.f32 %v449_v47 }
 0x11b   :  { %v1707_v49 = vpop.eup %1706  ;;  %1712 = vtanh.f32 %v442_v36 }
 0x11c   :  { %v450_v54 = vadd.f32 1.0, %v1707_v49  ;;  %v1709_v43 = vpop.eup %1708 }
 0x11e   :  { %1714 = vrcp.f32 %v450_v54 }
 0x11f   :  { %1716 = vpow2.f32 %v1627_v46 }
 0x120   :  { %1718 = vpow2.f32 %v1628_v8 }
 0x127   :  { %v1711_v26 = vpop.eup %1710 }
 0x128   :  { %v471_v48 = vmul.f32 %v1711_v26, %v1709_v43  ;;  %v1713_v3 = vpop.eup %1712  ;;  %v469_v40 = vmul.f32 0.0, %v1711_v26 }
 0x12a   :  { %475 = vrot.lane.b32.xlu0 %v471_v48, %s1916_s0 }
 0x12b   :  { %v1715_v2 = vpop.eup %1714 }
 0x12c   :  { %v472_v52 = vmul.f32 %v1715_v2, %v1713_v3  ;;  %v1717_v39 = vpop.eup %1716  ;;  %v470_v48 = vmul.f32 0.0, %v1715_v2  ;;  %v2951_v2 = vmov 0.0  }
 0x12d   :  { %v463_v47 = vadd.f32 1.0, %v1717_v39  ;;  %v1719_v49 = vpop.eup %1718 }
 0x12e   :  { %477 = vrot.lane.b32.xlu0 %v472_v52, %s1916_s0  ;;  %v464_v43 = vadd.f32 1.0, %v1719_v49  ;;  %v2952_v49 = vsel %vm2244_vm1, %v2209_v53, %v2333_v58 }
 0x12f   :  { %1720 = vrcp.f32 %v463_v47 }
 0x13c   :  { %v1721_v36 = vpop.eup %1720 }
 0x19c   :  { %v476_v54 = vpop.permute.xlu0 %475 }
 0x19d   :  { %v2446_v50 = vadd.f32 %v476_v54, %v469_v40 }
 0x19f   :  { %1722 = vtanh.f32 %v2446_v50 }
 0x1a0   :  { %v478_v41 = vpop.permute.xlu0 %477  ;;  %1724 = vrcp.f32 %v464_v43 }
 0x1a1   :  { %v2449_v3 = vadd.f32 %v478_v41, %v470_v48 }
 0x1a3   :  { %1726 = vtanh.f32 %v2449_v3 }
 0x1ac   :  { %v1723_v8 = vpop.eup %1722 }
 0x1ad   :  { %v2452_v31 = vmul.f32 %v1723_v8, %v1721_v36  ;;  %v1725_v52 = vpop.eup %1724  ;;  %v2953_v36 = vsel %vm2244_vm1, %v2215_v57, %v2355_v0 }
 0x1af   :  { %501 = vrot.lane.b32.xlu1 %v2452_v31, %s1916_s0 }
 0x1b0   :  { %v1727_v26 = vpop.eup %1726 }
 0x1b1   :  { %v2456_v46 = vmul.f32 %v1727_v26, %v1725_v52  ;;  %v2954_v26 = vsel %vm2251_vm2, %v2212_v55, %v2344_v30 }
 0x1b3   :  { %503 = vrot.lane.b32.xlu1 %v2456_v46, %s1916_s0 }
 0x221   :  { %v502_v41 = vpop.permute.xlu1 %501 }
 0x222   :  { %1629 = vmatmul.mubr.msk.f32.vlgmr.msra.gmra.mxu1 %vm358_vm3, %v502_v41 }
 0x223   :  { %579 = vmatprep.mubr.f32.mxu1 %v2951_v2  ;;  %675 = vmatpush1.msra.mxu1 %v1990_v11 }
 0x224   :  { %676 = vmatprep.subr.mxu1 %v1996_v12 }
 0x225   :  { %v504_v39 = vpop.permute.xlu1 %503  ;;  %677 = vmatpush1.msra.mxu1 %v2001_v13 }
 0x226   :  { %1630 = vmatmul.mubr.msk.f32.gmra.mxu1 %vm358_vm3, %v504_v39  ;;  %678 = vmatprep.subr.mxu1 %v2007_v14 }
 0x227   :  { %679 = vmatpush1.msra.mxu1 %v2014_v15  ;;  %722 = vmatprep.mubr.f32.mxu1 %v2951_v2 }
 0x228   :  { %680 = vmatprep.subr.mxu1 %v2024_v17 }
 0x229   :  { %681 = vmatpush1.msra.mxu1 %v2030_v18 }
 0x22a   :  { %682 = vmatprep.subr.mxu1 %v2037_v19 }
 0x22b   :  { %683 = vmatpush1.msra.mxu1 %v2045_v20 }
 0x22c   :  { %684 = vmatprep.subr.mxu1 %v2055_v22 }
 0x22d   :  { %685 = vmatpush1.msra.mxu1 %v2061_v23 }
 0x22e   :  { %686 = vmatprep.subr.mxu1 %v2068_v24 }
 0x22f   :  { %687 = vmatpush1.msra.mxu1 %v2076_v25 }
 0x230   :  { %688 = vmatprep.subr.mxu1 %v2086_v27 }
 0x231   :  { %689 = vmatpush1.msra.mxu1 %v2092_v28 }
 0x232   :  { %823 = vmatprep.subr.mxu1 %v1985_v10 }
 0x2e2   :  { %v575_v47 = vpop.f32.mrf.mxu1 }
 0x2e3   :  { %v586_v40 = vadd.f32 %v575_v47, %v2952_v49 }
 0x2e4   :  { %v577_v54 = vpop.f32.mrf.mxu1 }
 0x2e5   :  { %v1631_v43 = vmul.f32 -1.442695, %v586_v40  ;;  %v587_v41 = vadd.f32 %v577_v54, %v2954_v26  ;;  %v2955_v40 = vsel %vm2251_vm2, %v2218_v59, %v2366_v56 }
 0x2e6   :  { %v581_v48 = vpop.f32.mrf.mxu1 }
 0x2e7   :  { %1728 = vpow2.f32 %v1631_v43  ;;  %v588_v8 = vadd.f32 %v581_v48, %v2953_v36 }
 0x2e8   :  { %v583_v39 = vpop.f32.mrf.mxu1 }
 0x2e9   :  { %v1632_v52 = vmul.f32 -1.442695, %v588_v8  ;;  %v589_v43 = vadd.f32 %v583_v39, %v2955_v40 }
 0x2eb   :  { %1730 = vpow2.f32 %v1632_v52  ;;  %v1634_v6 = vmul.f32 -1.442695, %v589_v43 }
 0x2ec   :  { %1732 = vtanh.f32 %v587_v41 }
 0x2f4   :  { %v1729_v47 = vpop.eup %1728 }
 0x2f5   :  { %v596_v49 = vadd.f32 1.0, %v1729_v47  ;;  %v1633_v47 = vmul.f32 -1.442695, %v587_v41 }
 0x2f7   :  { %1734 = vrcp.f32 %v596_v49 }
 0x2f8   :  { %v1731_v48 = vpop.eup %1730  ;;  %1736 = vtanh.f32 %v589_v43 }
 0x2f9   :  { %v597_v36 = vadd.f32 1.0, %v1731_v48  ;;  %v1733_v8 = vpop.eup %1732 }
 0x2fb   :  { %1738 = vrcp.f32 %v597_v36 }
 0x2fc   :  { %1740 = vpow2.f32 %v1633_v47 }
 0x2fd   :  { %1742 = vpow2.f32 %v1634_v6 }
 0x304   :  { %v1735_v52 = vpop.eup %1734 }
 0x305   :  { %v618_v62 = vmul.f32 %v1735_v52, %v1733_v8  ;;  %v1737_v44 = vpop.eup %1736  ;;  %v616_v48 = vmul.f32 %v1735_v52, %v2446_v50 }
 0x307   :  { %622 = vrot.lane.b32.xlu0 %v618_v62, %s1916_s0 }
 0x308   :  { %v1739_v54 = vpop.eup %1738 }
 0x309   :  { %v619_v26 = vmul.f32 %v1739_v54, %v1737_v44  ;;  %v1741_v39 = vpop.eup %1740  ;;  %v617_v62 = vmul.f32 %v1739_v54, %v2449_v3 }
 0x30a   :  { %v610_v49 = vadd.f32 1.0, %v1741_v39  ;;  %v1743_v40 = vpop.eup %1742 }
 0x30b   :  { %624 = vrot.lane.b32.xlu1 %v619_v26, %s1916_s0  ;;  %v611_v8 = vadd.f32 1.0, %v1743_v40 }
 0x30c   :  { %1744 = vrcp.f32 %v610_v49  ;;  %v2956_v49 = vsel %vm2244_vm1, %v2221_v61, %v2289_v60 }
 0x319   :  { %v1745_v6 = vpop.eup %1744 }
 0x379   :  { %v623_v36 = vpop.permute.xlu0 %622 }
 0x37a   :  { %v2503_v45 = vadd.f32 %v623_v36, %v616_v48 }
 0x37c   :  { %1746 = vtanh.f32 %v2503_v45 }
 0x37d   :  { %v625_v44 = vpop.permute.xlu1 %624  ;;  %1748 = vrcp.f32 %v611_v8 }
 0x37e   :  { %v2507_v26 = vadd.f32 %v625_v44, %v617_v62  ;;  %v2957_v62 = vsel %vm2244_vm1, %v2227_v1, %v2311_v21 }
 0x380   :  { %1750 = vtanh.f32 %v2507_v26 }
 0x389   :  { %v1747_v41 = vpop.eup %1746 }
 0x38a   :  { %v2510_v43 = vmul.f32 %v1747_v41, %v1745_v6  ;;  %v1749_v50 = vpop.eup %1748  ;;  %v2958_v41 = vsel %vm2251_vm2, %v2224_v63, %v2300_v4 }
 0x38c   :  { %650 = vrot.lane.b32.xlu0 %v2510_v43, %s1916_s0 }
 0x38d   :  { %v1751_v52 = vpop.eup %1750 }
 0x38e   :  { %v2514_v47 = vmul.f32 %v1751_v52, %v1749_v50 }
 0x390   :  { %652 = vrot.lane.b32.xlu1 %v2514_v47, %s1916_s0 }
 0x3fe   :  { %v651_v3 = vpop.permute.xlu0 %650 }
 0x3ff   :  { %1635 = vmatmul.mubr.msk.f32.vlgmr.msra.gmra.mxu1 %vm358_vm3, %v651_v3 }
 0x400   :  { %728 = vmatprep.mubr.f32.mxu1 %v2951_v2  ;;  %824 = vmatpush1.msra.mxu1 %v1990_v11 }
 0x401   :  { %825 = vmatprep.subr.mxu1 %v1996_v12 }
 0x402   :  { %v653_v54 = vpop.permute.xlu1 %652  ;;  %826 = vmatpush1.msra.mxu1 %v2001_v13 }
 0x403   :  { %1636 = vmatmul.mubr.msk.f32.gmra.mxu1 %vm358_vm3, %v653_v54  ;;  %827 = vmatprep.subr.mxu1 %v2007_v14 }
 0x404   :  { %828 = vmatpush1.msra.mxu1 %v2014_v15  ;;  %871 = vmatprep.mubr.f32.mxu1 %v2951_v2 }
 0x405   :  { %829 = vmatprep.subr.mxu1 %v2024_v17 }
 0x406   :  { %830 = vmatpush1.msra.mxu1 %v2030_v18 }
 0x407   :  { %831 = vmatprep.subr.mxu1 %v2037_v19 }
 0x408   :  { %832 = vmatpush1.msra.mxu1 %v2045_v20 }
 0x409   :  { %833 = vmatprep.subr.mxu1 %v2055_v22 }
 0x40a   :  { %834 = vmatpush1.msra.mxu1 %v2061_v23 }
 0x40b   :  { %835 = vmatprep.subr.mxu1 %v2068_v24 }
 0x40c   :  { %836 = vmatpush1.msra.mxu1 %v2076_v25 }
 0x40d   :  { %837 = vmatprep.subr.mxu1 %v2086_v27 }
 0x40e   :  { %838 = vmatpush1.msra.mxu1 %v2092_v28 }
 0x40f   :  { %1105 = vmatprep.subr.mxu1 %v1985_v10 }
 0x4bf   :  { %v724_v39 = vpop.f32.mrf.mxu1 }
 0x4c0   :  { %v735_v40 = vadd.f32 %v724_v39, %v2956_v49  ;;  %v2959_v39 = vsel %vm2251_vm2, %v2230_v5, %v2322_v33 }
 0x4c1   :  { %v726_v48 = vpop.f32.mrf.mxu1 }
 0x4c2   :  { %v1637_v36 = vmul.f32 -1.442695, %v735_v40  ;;  %v736_v50 = vadd.f32 %v726_v48, %v2958_v41 }
 0x4c3   :  { %v730_v8 = vpop.f32.mrf.mxu1 }
 0x4c4   :  { %1752 = vpow2.f32 %v1637_v36  ;;  %v737_v44 = vadd.f32 %v730_v8, %v2957_v62 }
 0x4c5   :  { %v732_v52 = vpop.f32.mrf.mxu1 }
 0x4c6   :  { %v1638_v6 = vmul.f32 -1.442695, %v737_v44  ;;  %v738_v49 = vadd.f32 %v732_v52, %v2959_v39 }
 0x4c8   :  { %1754 = vpow2.f32 %v1638_v6  ;;  %v1640_v9 = vmul.f32 -1.442695, %v738_v49 }
 0x4c9   :  { %1756 = vtanh.f32 %v736_v50 }
 0x4d1   :  { %v1753_v3 = vpop.eup %1752 }
 0x4d2   :  { %v745_v54 = vadd.f32 1.0, %v1753_v3  ;;  %v1639_v3 = vmul.f32 -1.442695, %v736_v50 }
 0x4d4   :  { %1758 = vrcp.f32 %v745_v54 }
 0x4d5   :  { %v1755_v40 = vpop.eup %1754  ;;  %1760 = vtanh.f32 %v738_v49 }
 0x4d6   :  { %v746_v36 = vadd.f32 1.0, %v1755_v40  ;;  %v1757_v8 = vpop.eup %1756 }
 0x4d8   :  { %1762 = vrcp.f32 %v746_v36 }
 0x4d9   :  { %1764 = vpow2.f32 %v1639_v3 }
 0x4da   :  { %1766 = vpow2.f32 %v1640_v9 }
 0x4e1   :  { %v1759_v62 = vpop.eup %1758 }
 0x4e2   :  { %v767_v44 = vmul.f32 %v1759_v62, %v1757_v8  ;;  %v1761_v6 = vpop.eup %1760  ;;  %v765_v40 = vmul.f32 %v1759_v62, %v2503_v45  ;;  %v634_v45 = vmax.f32 %v2452_v31, %v2510_v43 }
 0x4e4   :  { %771 = vrot.lane.b32.xlu0 %v767_v44, %s1916_s0 }
 0x4e5   :  { %v1763_v48 = vpop.eup %1762 }
 0x4e6   :  { %v768_v41 = vmul.f32 %v1763_v48, %v1761_v6  ;;  %v1765_v52 = vpop.eup %1764  ;;  %v766_v44 = vmul.f32 %v1763_v48, %v2507_v26  ;;  %v635_v26 = vmax.f32 %v2456_v46, %v2514_v47 }
 0x4e7   :  { %v759_v54 = vadd.f32 1.0, %v1765_v52  ;;  %v1767_v39 = vpop.eup %1766 }
 0x4e8   :  { %773 = vrot.lane.b32.xlu1 %v768_v41, %s1916_s0  ;;  %v760_v8 = vadd.f32 1.0, %v1767_v39 }
 0x4e9   :  { %1768 = vrcp.f32 %v759_v54 }
 0x4f6   :  { %v1769_v9 = vpop.eup %1768 }
 0x556   :  { %v772_v36 = vpop.permute.xlu0 %771 }
 0x557   :  { %v2561_v59 = vadd.f32 %v772_v36, %v765_v40 }
 0x559   :  { %1770 = vtanh.f32 %v2561_v59 }
 0x55a   :  { %v774_v6 = vpop.permute.xlu1 %773  ;;  %1772 = vrcp.f32 %v760_v8  ;;  %v2963_v8 = vsel %vm2251_vm2, %v2242_v32, %v2278_v51 }
 0x55b   :  { %v2565_v41 = vadd.f32 %v774_v6, %v766_v44 }
 0x55d   :  { %1774 = vtanh.f32 %v2565_v41 }
 0x566   :  { %v1771_v50 = vpop.eup %1770 }
 0x567   :  { %v781_v49 = vmul.f32 %v1771_v50, %v1769_v9  ;;  %v1773_v62 = vpop.eup %1772 }
 0x569   :  { %799 = vrot.lane.b32.xlu0 %v781_v49, %s1916_s0  ;;  %v2571_v3 = vmax.f32 %v634_v45, %v781_v49 }
 0x56a   :  { %v1775_v52 = vpop.eup %1774 }
 0x56b   :  { %v782_v48 = vmul.f32 %v1775_v52, %v1773_v62 }
 0x56d   :  { %801 = vrot.lane.b32.xlu1 %v782_v48, %s1916_s0  ;;  %v2576_v54 = vmax.f32 %v635_v26, %v782_v48 }
 0x5db   :  { %v800_v39 = vpop.permute.xlu0 %799 }
 0x5dc   :  { %1641 = vmatmul.mubr.msk.f32.vlgmr.msra.gmra.mxu1 %vm358_vm3, %v800_v39 }
 0x5dd   :  { %877 = vmatprep.mubr.f32.mxu1 %v2951_v2  ;;  %1106 = vmatpush1.msra.mxu1 %v1990_v11 }
 0x5de   :  { %1107 = vmatprep.subr.mxu1 %v1996_v12  ;;  %v2960_v12 = vsel %vm2244_vm1, %v2233_v7, %v2249_v35 }
 0x5df   :  { %v802_v31 = vpop.permute.xlu1 %801  ;;  %1108 = vmatpush1.msra.mxu1 %v2001_v13 }
 0x5e0   :  { %1642 = vmatmul.mubr.msk.f32.gmra.mxu1 %vm358_vm3, %v802_v31  ;;  %1109 = vmatprep.subr.mxu1 %v2007_v14 }
 0x5e1   :  { %1110 = vmatpush1.msra.mxu1 %v2014_v15  ;;  %1153 = vmatprep.mubr.f32.mxu1 %v2951_v2 }
 0x5e2   :  { %1111 = vmatprep.subr.mxu1 %v2024_v17 }
 0x5e3   :  { %1112 = vmatpush1.msra.mxu1 %v2030_v18  ;;  %v2961_v18 = vsel %vm2244_vm1, %v2239_v29, %v2267_v42 }
 0x5e4   :  { %1113 = vmatprep.subr.mxu1 %v2037_v19 }
 0x5e5   :  { %1114 = vmatpush1.msra.mxu1 %v2045_v20 }
 0x5e6   :  { %1115 = vmatprep.subr.mxu1 %v2055_v22 }
 0x5e7   :  { %1116 = vmatpush1.msra.mxu1 %v2061_v23 }
 0x5e8   :  { %1117 = vmatprep.subr.mxu1 %v2068_v24 }
 0x5e9   :  { %1118 = vmatpush1.msra.mxu1 %v2076_v25 }
 0x5ea   :  { %1119 = vmatprep.subr.mxu1 %v2086_v27 }
 0x5eb   :  { %1120 = vmatpush1.msra.mxu1 %v2092_v28 }
 0x5ec   :  { %1387 = vmatprep.subr.mxu1 %v1985_v10  ;;  %v2962_v10 = vsel %vm2251_vm2, %v2236_v16, %v2256_v38 }
 0x69c   :  { %v873_v11 = vpop.f32.mrf.mxu1 }
 0x69d   :  { %v884_v13 = vadd.f32 %v873_v11, %v2960_v12 }
 0x69e   :  { %v875_v14 = vpop.f32.mrf.mxu1 }
 0x69f   :  { %v1643_v15 = vmul.f32 -1.442695, %v884_v13  ;;  %v885_v43 = vadd.f32 %v875_v14, %v2962_v10 }
 0x6a0   :  { %v879_v17 = vpop.f32.mrf.mxu1 }
 0x6a1   :  { %1776 = vpow2.f32 %v1643_v15  ;;  %v886_v19 = vadd.f32 %v879_v17, %v2961_v18  ;;  %v1645_v48 = vmul.f32 -1.442695, %v885_v43 }
 0x6a2   :  { %v881_v47 = vpop.f32.mrf.mxu1 }
 0x6a3   :  { %v1644_v46 = vmul.f32 -1.442695, %v886_v19  ;;  %v887_v44 = vadd.f32 %v881_v47, %v2963_v8 }
 0x6a5   :  { %1778 = vpow2.f32 %v1644_v46  ;;  %v1646_v39 = vmul.f32 -1.442695, %v887_v44 }
 0x6a6   :  { %1780 = vtanh.f32 %v885_v43 }
 0x6ae   :  { %v1777_v40 = vpop.eup %1776 }
 0x6af   :  { %v894_v36 = vadd.f32 1.0, %v1777_v40 }
 0x6b1   :  { %1782 = vrcp.f32 %v894_v36 }
 0x6b2   :  { %v1779_v6 = vpop.eup %1778  ;;  %1784 = vtanh.f32 %v887_v44 }
 0x6b3   :  { %v895_v9 = vadd.f32 1.0, %v1779_v6  ;;  %v1781_v50 = vpop.eup %1780  ;;  %v2645_v6 = vld [vmem:[%s2922_s2 + $0x70] sm:$0xff] }
 0x6b5   :  { %1786 = vrcp.f32 %v895_v9  ;;  %v2651_v9 = vld [vmem:[%s2922_s2 + $0x68] sm:$0xff] }
 0x6b6   :  { %1788 = vpow2.f32 %v1645_v48  ;;  %v2689_v48 = vld [vmem:[%s2922_s2 + $0x38] sm:$0xff] }
 0x6b7   :  { %1790 = vpow2.f32 %v1646_v39 }
 0x6be   :  { %v1783_v45 = vpop.eup %1782 }
 0x6bf   :  { %v916_v49 = vmul.f32 %v1783_v45, %v1781_v50  ;;  %v1785_v62 = vpop.eup %1784  ;;  %v914_v13 = vmul.f32 %v1783_v45, %v2561_v59  ;;  %v2657_v45 = vld [vmem:[%s2922_s2 + $0x60] sm:$0xff] }
 0x6c1   :  { %920 = vrot.lane.b32.xlu0 %v916_v49, %s1916_s0  ;;  %v2664_v49 = vld [vmem:[%s2922_s2 + $0x58] sm:$0xff] }
 0x6c2   :  { %v1787_v52 = vpop.eup %1786 }
 0x6c3   :  { %v917_v26 = vmul.f32 %v1787_v52, %v1785_v62  ;;  %v1789_v31 = vpop.eup %1788  ;;  %v915_v18 = vmul.f32 %v1787_v52, %v2565_v41  ;;  %v2670_v62 = vld [vmem:[%s2922_s2 + $0x50] sm:$0xff]  ;;  %v2677_v52 = vld [vmem:[%s2922_s2 + $0x48] sm:$0xff] }
 0x6c4   :  { %v908_v11 = vadd.f32 1.0, %v1789_v31  ;;  %v1791_v12 = vpop.eup %1790 }
 0x6c5   :  { %922 = vrot.lane.b32.xlu1 %v917_v26, %s1916_s0  ;;  %v909_v17 = vadd.f32 1.0, %v1791_v12  ;;  %v2683_v26 = vld [vmem:[%s2922_s2 + $0x40] sm:$0xff] }
 0x6c6   :  { %1792 = vrcp.f32 %v908_v11 }
 0x6d3   :  { %v1793_v10 = vpop.eup %1792 }
 0x733   :  { %v921_v14 = vpop.permute.xlu0 %920 }
 0x734   :  { %v2621_v15 = vadd.f32 %v921_v14, %v914_v13  ;;  %v2967_v14 = vsel %vm2251_vm2, %v2278_v51, %v2242_v32 }
 0x736   :  { %1794 = vtanh.f32 %v2621_v15 }
 0x737   :  { %v923_v19 = vpop.permute.xlu1 %922  ;;  %1796 = vrcp.f32 %v909_v17 }
 0x738   :  { %v2625_v46 = vadd.f32 %v923_v19, %v915_v18 }
 0x73a   :  { %1798 = vtanh.f32 %v2625_v46 }
 0x743   :  { %v1795_v43 = vpop.eup %1794 }
 0x744   :  { %v2628_v47 = vmul.f32 %v1795_v43, %v1793_v10  ;;  %v1797_v59 = vpop.eup %1796 }
 0x746   :  { %940 = vrot.lane.b32.xlu0 %v2628_v47, %s1916_s0  ;;  %v932_v40 = vmax.f32 %v2571_v3, %v2628_v47  ;;  %v1909_v47 = vld [vmem:[%s2922_s2 + $0x28] sm:$0xff] }
 0x747   :  { %v1799_v36 = vpop.eup %1798 }
 0x748   :  { %v2634_v8 = vmul.f32 %v1799_v36, %v1797_v59 }
 0x74a   :  { %942 = vrot.lane.b32.xlu1 %v2634_v8, %s1916_s0  ;;  %v933_v41 = vmax.f32 %v2576_v54, %v2634_v8  ;;  %v1908_v54 = vld [vmem:[%s2922_s2 + $0x30] sm:$0xff]  ;;  %v1911_v8 = vld [vmem:[%s2922_s2 + $0x18] sm:$0xff] }
 0x7b8   :  { %v941_v44 = vpop.permute.xlu0 %940 }
 0x7b9   :  { %1647 = vmatmul.mubr.msk.f32.vlgmr.msra.gmra.mxu0 %vm358_vm3, %v941_v44 }
 0x7ba   :  { %1018 = vmatprep.mubr.f32.mxu0 %v2951_v2  ;;  %1247 = vmatpush1.msra.mxu0 %v2645_v6 }
 0x7bb   :  { %1248 = vmatprep.subr.mxu0 %v2651_v9 }
 0x7bc   :  { %v943_v50 = vpop.permute.xlu1 %942  ;;  %1249 = vmatpush1.msra.mxu0 %v2657_v45 }
 0x7bd   :  { %1648 = vmatmul.mubr.msk.f32.gmra.mxu0 %vm358_vm3, %v943_v50  ;;  %1250 = vmatprep.subr.mxu0 %v2664_v49 }
 0x7be   :  { %1251 = vmatpush1.msra.mxu0 %v2670_v62  ;;  %1294 = vmatprep.mubr.f32.mxu0 %v2951_v2 }
 0x7bf   :  { %1252 = vmatprep.subr.mxu0 %v2677_v52 }
 0x7c0   :  { %1253 = vmatpush1.msra.mxu0 %v2683_v26 }
 0x7c1   :  { %1254 = vmatprep.subr.mxu0 %v2689_v48 }
 0x7c2   :  { %1255 = vmatpush1.msra.mxu0 %v2045_v20  ;;  %v2964_v20 = vsel %vm2244_vm1, %v2249_v35, %v2233_v7 }
 0x7c3   :  { %1256 = vmatprep.subr.mxu0 %v2055_v22 }
 0x7c4   :  { %1257 = vmatpush1.msra.mxu0 %v2061_v23 }
 0x7c5   :  { %1258 = vmatprep.subr.mxu0 %v2068_v24  ;;  %v2965_v24 = vsel %vm2244_vm1, %v2267_v42, %v2239_v29 }
 0x7c6   :  { %1259 = vmatpush1.msra.mxu0 %v2076_v25 }
 0x7c7   :  { %1260 = vmatprep.subr.mxu0 %v2086_v27 }
 0x7c8   :  { %1261 = vmatpush1.msra.mxu0 %v2092_v28  ;;  %v2966_v28 = vsel %vm2251_vm2, %v2256_v38, %v2236_v16 }
 0x7c9   :  { %1682 = vmatprep.subr.mxu0 %v2951_v2 }
 0x879   :  { %v1014_v39 = vpop.f32.mrf.mxu0 }
 0x87a   :  { %v1025_v31 = vadd.f32 %v1014_v39, %v2964_v20 }
 0x87b   :  { %v1016_v22 = vpop.f32.mrf.mxu0 }
 0x87c   :  { %v1649_v11 = vmul.f32 -1.442695, %v1025_v31  ;;  %v1026_v12 = vadd.f32 %v1016_v22, %v2966_v28 }
 0x87d   :  { %v1020_v23 = vpop.f32.mrf.mxu0 }
 0x87e   :  { %1800 = vpow2.f32 %v1649_v11  ;;  %v1027_v25 = vadd.f32 %v1020_v23, %v2965_v24  ;;  %v1651_v59 = vmul.f32 -1.442695, %v1026_v12 }
 0x87f   :  { %v1022_v7 = vpop.f32.mrf.mxu0 }
 0x880   :  { %v1650_v27 = vmul.f32 -1.442695, %v1027_v25  ;;  %v1028_v17 = vadd.f32 %v1022_v7, %v2967_v14 }
 0x882   :  { %1802 = vpow2.f32 %v1650_v27  ;;  %v1652_v36 = vmul.f32 -1.442695, %v1028_v17 }
 0x883   :  { %1804 = vtanh.f32 %v1026_v12 }
 0x88b   :  { %v1801_v35 = vpop.eup %1800 }
 0x88c   :  { %v1035_v13 = vadd.f32 1.0, %v1801_v35 }
 0x88e   :  { %1806 = vrcp.f32 %v1035_v13  ;;  %v2969_v13 = vsel %vm2244_vm1, %v2311_v21, %v2227_v1 }
 0x88f   :  { %v1803_v29 = vpop.eup %1802  ;;  %1808 = vtanh.f32 %v1028_v17 }
 0x890   :  { %v1036_v42 = vadd.f32 1.0, %v1803_v29  ;;  %v1805_v18 = vpop.eup %1804  ;;  %v2970_v29 = vsel %vm2251_vm2, %v2300_v4, %v2224_v63 }
 0x892   :  { %1810 = vrcp.f32 %v1036_v42 }
 0x893   :  { %1812 = vpow2.f32 %v1651_v59 }
 0x894   :  { %1814 = vpow2.f32 %v1652_v36 }
 0x89b   :  { %v1807_v19 = vpop.eup %1806 }
 0x89c   :  { %v1057_v10 = vmul.f32 %v1807_v19, %v1805_v18  ;;  %v1809_v16 = vpop.eup %1808  ;;  %v1055_v50 = vmul.f32 %v1807_v19, %v2621_v15  ;;  %v2971_v19 = vsel %vm2251_vm2, %v2322_v33, %v2230_v5 }
 0x89e   :  { %1061 = vrot.lane.b32.xlu0 %v1057_v10, %s1916_s0 }
 0x89f   :  { %v1811_v38 = vpop.eup %1810 }
 0x8a0   :  { %v1058_v43 = vmul.f32 %v1811_v38, %v1809_v16  ;;  %v1813_v32 = vpop.eup %1812  ;;  %v1056_v22 = vmul.f32 %v1811_v38, %v2625_v46 }
 0x8a1   :  { %v1049_v51 = vadd.f32 1.0, %v1813_v32  ;;  %v1815_v44 = vpop.eup %1814 }
 0x8a2   :  { %1063 = vrot.lane.b32.xlu1 %v1058_v43, %s1916_s0  ;;  %v1050_v31 = vadd.f32 1.0, %v1815_v44 }
 0x8a3   :  { %1816 = vrcp.f32 %v1049_v51 }
 0x8b0   :  { %v1817_v24 = vpop.eup %1816 }
 0x910   :  { %v1062_v39 = vpop.permute.xlu0 %1061 }
 0x911   :  { %v2723_v20 = vadd.f32 %v1062_v39, %v1055_v50 }
 0x913   :  { %1818 = vtanh.f32 %v2723_v20 }
 0x914   :  { %v1064_v11 = vpop.permute.xlu1 %1063  ;;  %1820 = vrcp.f32 %v1050_v31 }
 0x915   :  { %v2727_v23 = vadd.f32 %v1064_v11, %v1056_v22 }
 0x917   :  { %1822 = vtanh.f32 %v2727_v23 }
 0x920   :  { %v1819_v25 = vpop.eup %1818 }
 0x921   :  { %v1071_v27 = vmul.f32 %v1819_v25, %v1817_v24  ;;  %v1821_v28 = vpop.eup %1820 }
 0x923   :  { %1081 = vrot.lane.b32.xlu0 %v1071_v27, %s1916_s0  ;;  %v2734_v15 = vmax.f32 %v932_v40, %v1071_v27  ;;  %v1910_v40 = vld [vmem:[%s2922_s2 + $0x20] sm:$0xff] }
 0x924   :  { %v1823_v12 = vpop.eup %1822 }
 0x925   :  { %v1072_v7 = vmul.f32 %v1823_v12, %v1821_v28 }
 0x927   :  { %1083 = vrot.lane.b32.xlu1 %v1072_v7, %s1916_s0  ;;  %v2740_v46 = vmax.f32 %v933_v41, %v1072_v7  ;;  %v1912_v41 = vld [vmem:[%s2922_s2 + $0x10] sm:$0xff] }
 0x995   :  { %v1082_v35 = vpop.permute.xlu0 %1081 }
 0x996   :  { %1653 = vmatmul.mubr.msk.f32.vlgmr.msra.gmra.mxu1 %vm358_vm3, %v1082_v35 }
 0x997   :  { %1159 = vmatprep.mubr.f32.mxu1 %v2951_v2  ;;  %1388 = vmatpush1.msra.mxu1 %v2645_v6  ;;  %v1913_v6 = vld [vmem:[%s2922_s2 + $0x8] sm:$0xff] }
 0x998   :  { %1389 = vmatprep.subr.mxu1 %v2651_v9  ;;  %v1914_v9 = vld [vmem:[%s2922_s2] sm:$0xff] }
 0x999   :  { %v1084_v3 = vpop.permute.xlu1 %1083  ;;  %1390 = vmatpush1.msra.mxu1 %v2657_v45 }
 0x99a   :  { %1654 = vmatmul.mubr.msk.f32.gmra.mxu1 %vm358_vm3, %v1084_v3  ;;  %1391 = vmatprep.subr.mxu1 %v2664_v49  ;;  %v2968_v49 = vsel %vm2244_vm1, %v2289_v60, %v2221_v61 }
 0x99b   :  { %1392 = vmatpush1.msra.mxu1 %v2670_v62  ;;  %1435 = vmatprep.mubr.f32.mxu1 %v2951_v2 }
 0x99c   :  { %1393 = vmatprep.subr.mxu1 %v2677_v52 }
 0x99d   :  { %1394 = vmatpush1.msra.mxu1 %v2683_v26 }
 0x99e   :  { %1395 = vmatprep.subr.mxu1 %v2689_v48 }
 0x99f   :  { %1396 = vmatpush1.msra.mxu1 %v1908_v54 }
 0x9a0   :  { %1397 = vmatprep.subr.mxu1 %v1909_v47 }
 0x9a1   :  { %1398 = vmatpush1.msra.mxu1 %v1910_v40 }
 0x9a2   :  { %1399 = vmatprep.subr.mxu1 %v1911_v8 }
 0x9a3   :  { %1400 = vmatpush1.msra.mxu1 %v1912_v41 }
 0x9a4   :  { %1401 = vmatprep.subr.mxu1 %v1913_v6 }
 0x9a5   :  { %1402 = vmatpush1.msra.mxu1 %v1914_v9 }
 0xa56   :  { %v1155_v45 = vpop.f32.mrf.mxu1 }
 0xa57   :  { %v1166_v62 = vadd.f32 %v1155_v45, %v2968_v49  ;;  %v2974_v49 = vsel %vm2251_vm2, %v2344_v30, %v2212_v55 }
 0xa58   :  { %v1157_v52 = vpop.f32.mrf.mxu1 }
 0xa59   :  { %v1655_v26 = vmul.f32 -1.442695, %v1166_v62  ;;  %v1167_v42 = vadd.f32 %v1157_v52, %v2970_v29 }
 0xa5a   :  { %v1161_v48 = vpop.f32.mrf.mxu1 }
 0xa5b   :  { %1824 = vpow2.f32 %v1655_v26  ;;  %v1168_v14 = vadd.f32 %v1161_v48, %v2969_v13  ;;  %v1657_v36 = vmul.f32 -1.442695, %v1167_v42  ;;  %v2975_v26 = vld [vmem:[#allocation3_spill] sm:$0xff] }
 0xa5c   :  { %v1163_v61 = vpop.f32.mrf.mxu1  ;;  %v2976_v48 = vsel %vm2251_vm2, %v2366_v56, %v2975_v26 }
 0xa5d   :  { %v1656_v17 = vmul.f32 -1.442695, %v1168_v14  ;;  %v1169_v10 = vadd.f32 %v1163_v61, %v2971_v19 }
 0xa5f   :  { %1826 = vpow2.f32 %v1656_v17  ;;  %v1658_v32 = vmul.f32 -1.442695, %v1169_v10 }
 0xa60   :  { %1828 = vtanh.f32 %v1167_v42 }
 0xa68   :  { %v1825_v60 = vpop.eup %1824 }
 0xa69   :  { %v1176_v18 = vadd.f32 1.0, %v1825_v60 }
 0xa6b   :  { %1830 = vrcp.f32 %v1176_v18 }
 0xa6c   :  { %v1827_v1 = vpop.eup %1826  ;;  %1832 = vtanh.f32 %v1169_v10 }
 0xa6d   :  { %v1177_v21 = vadd.f32 1.0, %v1827_v1  ;;  %v1829_v16 = vpop.eup %1828 }
 0xa6f   :  { %1834 = vrcp.f32 %v1177_v21 }
 0xa70   :  { %1836 = vpow2.f32 %v1657_v36 }
 0xa71   :  { %1838 = vpow2.f32 %v1658_v32 }
 0xa78   :  { %v1831_v38 = vpop.eup %1830 }
 0xa79   :  { %v1198_v43 = vmul.f32 %v1831_v38, %v1829_v16  ;;  %v1833_v63 = vpop.eup %1832  ;;  %v1196_v44 = vmul.f32 %v1831_v38, %v2723_v20 }
 0xa7b   :  { %1202 = vrot.lane.b32.xlu0 %v1198_v43, %s1916_s0 }
 0xa7c   :  { %v1835_v4 = vpop.eup %1834 }
 0xa7d   :  { %v1199_v59 = vmul.f32 %v1835_v4, %v1833_v63  ;;  %v1837_v5 = vpop.eup %1836  ;;  %v1197_v22 = vmul.f32 %v1835_v4, %v2727_v23 }
 0xa7e   :  { %v1190_v33 = vadd.f32 1.0, %v1837_v5  ;;  %v1839_v51 = vpop.eup %1838 }
 0xa7f   :  { %1204 = vrot.lane.b32.xlu1 %v1199_v59, %s1916_s0  ;;  %v1191_v31 = vadd.f32 1.0, %v1839_v51 }
 0xa80   :  { %1840 = vrcp.f32 %v1190_v33 }
 0xa8d   :  { %v1841_v25 = vpop.eup %1840 }
 0xaed   :  { %v1203_v50 = vpop.permute.xlu0 %1202 }
 0xaee   :  { %v1208_v39 = vadd.f32 %v1203_v50, %v1196_v44 }
 0xaf0   :  { %1842 = vtanh.f32 %v1208_v39 }
 0xaf1   :  { %v1205_v11 = vpop.permute.xlu1 %1204  ;;  %1844 = vrcp.f32 %v1191_v31 }
 0xaf2   :  { %v1209_v24 = vadd.f32 %v1205_v11, %v1197_v22  ;;  %v2977_v22 = vld [vmem:[#allocation5_spill] sm:$0xff]  ;;  %v2978_v11 = vld [vmem:[#allocation4_spill] sm:$0xff] }
 0xaf4   :  { %1846 = vtanh.f32 %v1209_v24 }
 0xafd   :  { %v1843_v27 = vpop.eup %1842 }
 0xafe   :  { %v2799_v28 = vmul.f32 %v1843_v27, %v1841_v25  ;;  %v1845_v12 = vpop.eup %1844 }
 0xb00   :  { %1222 = vrot.lane.b32.xlu0 %v2799_v28, %s1916_s0  ;;  %v1214_v20 = vmax.f32 %v2734_v15, %v2799_v28  ;;  %v2972_v15 = vsel %vm2244_vm1, %v2333_v58, %v2209_v53 }
 0xb01   :  { %v1847_v7 = vpop.eup %1846 }
 0xb02   :  { %v2805_v35 = vmul.f32 %v1847_v7, %v1845_v12  ;;  %v2981_v7 = vld [vmem:[#allocation8_spill] sm:$0xff] }
 0xb04   :  { %1224 = vrot.lane.b32.xlu1 %v2805_v35, %s1916_s0  ;;  %v1215_v23 = vmax.f32 %v2740_v46, %v2805_v35  ;;  %v2973_v46 = vsel %vm2244_vm1, %v2355_v0, %v2215_v57 }
 0xb72   :  { %v1223_v3 = vpop.permute.xlu0 %1222 }
 0xb73   :  { %1659 = vmatmul.mubr.msk.f32.vlgmr.msra.gmra.mxu0 %vm358_vm3, %v1223_v3 }
 0xb74   :  { %1300 = vmatprep.mubr.f32.mxu0 %v2951_v2  ;;  %1683 = vmatpush3.msra.mxu0 %v1507_v37 }
 0xb75   :  { %1684 = vmatprep.subr.mxu0 %v2951_v2 }
 0xb76   :  { %v1225_v54 = vpop.permute.xlu1 %1224 }
 0xb77   :  { %1660 = vmatmul.mubr.msk.f32.gmra.mxu0 %vm358_vm3, %v1225_v54  ;;  %v2983_v54 = vld [vmem:[#allocation7_spill] sm:$0xff] }
 0xb78   :  { %1698 = vmatprep.mubr.msk.f32.mxu0 %vm1917_vm4, %v2951_v2 }
 0xc33   :  { %v1296_v47 = vpop.f32.mrf.mxu0 }
 0xc34   :  { %v1307_v40 = vadd.f32 %v1296_v47, %v2972_v15  ;;  %v2984_v47 = vld [vmem:[#allocation6_spill] sm:$0xff] }
 0xc35   :  { %v1298_v8 = vpop.f32.mrf.mxu0  ;;  %v2985_v15 = vsel %vm2251_vm2, %v2983_v54, %v2984_v47 }
 0xc36   :  { %v1661_v41 = vmul.f32 -1.442695, %v1307_v40  ;;  %v1308_v62 = vadd.f32 %v1298_v8, %v2974_v49 }
 0xc37   :  { %v1302_v6 = vpop.f32.mrf.mxu0 }
 0xc38   :  { %1848 = vpow2.f32 %v1661_v41  ;;  %v1309_v9 = vadd.f32 %v1302_v6, %v2973_v46  ;;  %v1663_v61 = vmul.f32 -1.442695, %v1308_v62  ;;  %v2986_v46 = vld [vmem:[#allocation11_spill] sm:$0xff] }
 0xc39   :  { %v1304_v53 = vpop.f32.mrf.mxu0 }
 0xc3a   :  { %v1662_v45 = vmul.f32 -1.442695, %v1309_v9  ;;  %v1310_v13 = vadd.f32 %v1304_v53, %v2976_v48  ;;  %v2988_v9 = vsel %vm2251_vm2, %v2986_v46, %v2987_v34 }
 0xc3c   :  { %1850 = vpow2.f32 %v1662_v45  ;;  %v1664_v60 = vmul.f32 -1.442695, %v1310_v13 }
 0xc3d   :  { %1852 = vtanh.f32 %v1308_v62 }
 0xc45   :  { %v1849_v58 = vpop.eup %1848 }
 0xc46   :  { %v1317_v52 = vadd.f32 1.0, %v1849_v58 }
 0xc48   :  { %1854 = vrcp.f32 %v1317_v52 }
 0xc49   :  { %v1851_v57 = vpop.eup %1850  ;;  %1856 = vtanh.f32 %v1310_v13 }
 0xc4a   :  { %v1318_v0 = vadd.f32 1.0, %v1851_v57  ;;  %v1853_v14 = vpop.eup %1852  ;;  %v1506_v57 = vld [vmem:[%s2924_s4 + $0x30] sm:$0xff] }
 0xc4b   :  { %1685 = vmatpush3.msra.mxu0 %v1506_v57 }
 0xc4c   :  { %1858 = vrcp.f32 %v1318_v0  ;;  %v1505_v0 = vld [vmem:[%s2924_s4 + $0x28] sm:$0xff]  ;;  %1686 = vmatprep.subr.mxu0 %v2951_v2 }
 0xc4d   :  { %1860 = vpow2.f32 %v1663_v61  ;;  %1687 = vmatpush3.msra.mxu0 %v1505_v0 }
 0xc4e   :  { %1862 = vpow2.f32 %v1664_v60  ;;  %1688 = vmatprep.subr.mxu0 %v2951_v2 }
 0xc55   :  { %v1855_v17 = vpop.eup %1854 }
 0xc56   :  { %v1339_v29 = vmul.f32 %v1855_v17, %v1853_v14  ;;  %v1857_v55 = vpop.eup %1856  ;;  %v1337_v10 = vmul.f32 %v1855_v17, %v1208_v39  ;;  %v1504_v14 = vld [vmem:[%s2924_s4 + $0x20] sm:$0xff]  ;;  %v1503_v17 = vld [vmem:[%s2924_s4 + $0x18] sm:$0xff] }
 0xc57   :  { %1689 = vmatpush3.msra.mxu0 %v1504_v14 }
 0xc58   :  { %1343 = vrot.lane.b32.xlu0 %v1339_v29, %s1916_s0  ;;  %1690 = vmatprep.subr.mxu0 %v2951_v2  ;;  %v1502_v29 = vld [vmem:[%s2924_s4 + $0x10] sm:$0xff] }
 0xc59   :  { %v1859_v30 = vpop.eup %1858  ;;  %1691 = vmatpush3.msra.mxu0 %v1503_v17 }
 0xc5a   :  { %v1340_v42 = vmul.f32 %v1859_v30, %v1857_v55  ;;  %v1861_v56 = vpop.eup %1860  ;;  %v1338_v38 = vmul.f32 %v1859_v30, %v1209_v24  ;;  %v2979_v24 = vsel %vm2244_vm1, %v2977_v22, %v2978_v11  ;;  %1692 = vmatprep.subr.mxu0 %v2951_v2  ;;  %v1501_v55 = vld [vmem:[%s2924_s4 + $0x8] sm:$0xff]  ;;  %v1500_v30 = vld [vmem:[%s2924_s4] sm:$0xff] }
 0xc5b   :  { %v1331_v18 = vadd.f32 1.0, %v1861_v56  ;;  %v1863_v19 = vpop.eup %1862  ;;  %1693 = vmatpush3.msra.mxu0 %v1502_v29 }
 0xc5c   :  { %1345 = vrot.lane.b32.xlu1 %v1340_v42, %s1916_s0  ;;  %v1332_v16 = vadd.f32 1.0, %v1863_v19  ;;  %1694 = vmatprep.subr.mxu0 %v2951_v2 }
 0xc5d   :  { %1864 = vrcp.f32 %v1331_v18  ;;  %1695 = vmatpush3.msra.mxu0 %v1501_v55 }
 0xc5e   :  { %1696 = vmatprep.subr.mxu0 %v2951_v2 }
 0xc5f   :  { %1697 = vmatpush3.msra.mxu0 %v1500_v30 }
 0xc6a   :  { %v1865_v4 = vpop.eup %1864 }
 0xcca   :  { %v1344_v1 = vpop.permute.xlu0 %1343 }
 0xccb   :  { %v2836_v21 = vadd.f32 %v1344_v1, %v1337_v10 }
 0xccd   :  { %1866 = vtanh.f32 %v2836_v21 }
 0xcce   :  { %v1346_v43 = vpop.permute.xlu1 %1345  ;;  %1868 = vrcp.f32 %v1332_v16 }
 0xccf   :  { %v2839_v63 = vadd.f32 %v1346_v43, %v1338_v38 }
 0xcd1   :  { %1870 = vtanh.f32 %v2839_v63 }
 0xcda   :  { %v1867_v59 = vpop.eup %1866 }
 0xcdb   :  { %v1353_v36 = vmul.f32 %v1867_v59, %v1865_v4  ;;  %v1869_v32 = vpop.eup %1868 }
 0xcdd   :  { %1363 = vrot.lane.b32.xlu0 %v1353_v36, %s1916_s0  ;;  %v2843_v5 = vmax.f32 %v1214_v20, %v1353_v36  ;;  %v2980_v20 = vld [vmem:[#allocation9_spill] sm:$0xff] }
 0xcde   :  { %v1871_v33 = vpop.eup %1870  ;;  %v2982_v35 = vsel %vm2244_vm1, %v2980_v20, %v2981_v7 }
 0xcdf   :  { %v1354_v51 = vmul.f32 %v1871_v33, %v1869_v32 }
 0xce1   :  { %1365 = vrot.lane.b32.xlu1 %v1354_v51, %s1916_s0  ;;  %v2846_v44 = vmax.f32 %v1215_v23, %v1354_v51 }
 0xd4f   :  { %v1364_v50 = vpop.permute.xlu0 %1363 }
 0xd50   :  { %1665 = vmatmul.mubr.msk.f32.vlgmr.msra.gmra.mxu1 %vm358_vm3, %v1364_v50 }
 0xd51   :  { %1441 = vmatprep.mubr.f32.mxu1 %v2951_v2 }
 0xd53   :  { %v1366_v39 = vpop.permute.xlu1 %1365 }
 0xd54   :  { %1666 = vmatmul.mubr.msk.f32.gmra.mxu1 %vm358_vm3, %v1366_v39 }
 0xe10   :  { %v1437_v31 = vpop.f32.mrf.mxu1 }
 0xe11   :  { %v1448_v25 = vadd.f32 %v1437_v31, %v2979_v24 }
 0xe12   :  { %v1439_v27 = vpop.f32.mrf.mxu1 }
 0xe13   :  { %v1667_v28 = vmul.f32 -1.442695, %v1448_v25  ;;  %v1449_v40 = vadd.f32 %v1439_v27, %v2985_v15 }
 0xe14   :  { %v1443_v12 = vpop.f32.mrf.mxu1 }
 0xe15   :  { %1872 = vpow2.f32 %v1667_v28  ;;  %v1450_v23 = vadd.f32 %v1443_v12, %v2982_v35  ;;  %v1669_v42 = vmul.f32 -1.442695, %v1449_v40 }
 0xe16   :  { %v1445_v8 = vpop.f32.mrf.mxu1 }
 0xe17   :  { %v1668_v3 = vmul.f32 -1.442695, %v1450_v23  ;;  %v1451_v45 = vadd.f32 %v1445_v8, %v2988_v9 }
 0xe19   :  { %1874 = vpow2.f32 %v1668_v3  ;;  %v1670_v61 = vmul.f32 -1.442695, %v1451_v45 }
 0xe1a   :  { %1876 = vtanh.f32 %v1449_v40 }
 0xe22   :  { %v1873_v41 = vpop.eup %1872 }
 0xe23   :  { %v1458_v6 = vadd.f32 1.0, %v1873_v41 }
 0xe25   :  { %1878 = vrcp.f32 %v1458_v6 }
 0xe26   :  { %v1875_v49 = vpop.eup %1874  ;;  %1880 = vtanh.f32 %v1451_v45 }
 0xe27   :  { %v1459_v62 = vadd.f32 1.0, %v1875_v49  ;;  %v1877_v53 = vpop.eup %1876 }
 0xe29   :  { %1882 = vrcp.f32 %v1459_v62 }
 0xe2a   :  { %1884 = vpow2.f32 %v1669_v42 }
 0xe2b   :  { %1886 = vpow2.f32 %v1670_v61 }
 0xe32   :  { %v1879_v58 = vpop.eup %1878 }
 0xe33   :  { %v1480_v52 = vmul.f32 %v1879_v58, %v1877_v53  ;;  %v1881_v26 = vpop.eup %1880  ;;  %v1478_v19 = vmul.f32 %v1879_v58, %v2836_v21 }
 0xe35   :  { %1484 = vrot.lane.b32.xlu0 %v1480_v52, %s1916_s0 }
 0xe36   :  { %v1883_v48 = vpop.eup %1882 }
 0xe37   :  { %v1481_v13 = vmul.f32 %v1883_v48, %v1881_v26  ;;  %v1885_v60 = vpop.eup %1884  ;;  %v1479_v38 = vmul.f32 %v1883_v48, %v2839_v63  ;;  %v1671_v63 = vld [vmem:[%s2925_s5] ss:$0 sm:$0xff] }
 0xe38   :  { %v1472_v56 = vadd.f32 1.0, %v1885_v60  ;;  %v1887_v18 = vpop.eup %1886 }
 0xe39   :  { %1486 = vrot.lane.b32.xlu1 %v1481_v13, %s1916_s0  ;;  %v1473_v16 = vadd.f32 1.0, %v1887_v18 }
 0xe3a   :  { %1888 = vrcp.f32 %v1472_v56 }
 0xe47   :  { %v1889_v2 = vpop.eup %1888 }
 0xea7   :  { %v1485_v10 = vpop.permute.xlu0 %1484 }
 0xea8   :  { %v1490_v1 = vadd.f32 %v1485_v10, %v1478_v19 }
 0xeaa   :  { %1890 = vtanh.f32 %v1490_v1 }
 0xeab   :  { %v1487_v43 = vpop.permute.xlu1 %1486  ;;  %1892 = vrcp.f32 %v1473_v16 }
 0xeac   :  { %v1491_v4 = vadd.f32 %v1487_v43, %v1479_v38 }
 0xeae   :  { %1894 = vtanh.f32 %v1491_v4 }
 0xeb7   :  { %v1891_v59 = vpop.eup %1890 }
 0xeb8   :  { %v1494_v36 = vmul.f32 %v1891_v59, %v1889_v2  ;;  %v1893_v32 = vpop.eup %1892 }
 0xeba   :  { %v1496_v33 = vmax.f32 %v2843_v5, %v1494_v36 }
 0xebb   :  { %v1895_v51 = vpop.eup %1894 }
 0xebc   :  { %v1495_v50 = vmul.f32 %v1895_v51, %v1893_v32 }
 0xebe   :  { %v1497_v21 = vmax.f32 %v2846_v44, %v1495_v50 }
 0xec0   :  { %v1498_v39 = vsub.f32 %v1496_v33, %v1497_v21 }
 0xec2   :  { %v1499_v31 = vand.u32 2147483647, %v1498_v39 }
 0xec4   :  { %1516 = vrot.lane.b32.xlu0 %v1499_v31, %s1916_s0 }
 0xf36   :  { %v1517_v22 = vpop.permute.xlu0 %1516 }
 0xf37   :  { %1699 = vmatmul.mubr.msk.f32.vlgmr.msra.gmra.mxu0 %vm358_vm3, %v1517_v22 }
 0xff7   :  { %v1586_v11 = vpop.f32.mrf.mxu0 }
 0xff8   :  { %v1587_v24 = vadd.f32 %v1671_v63, %v1586_v11 }
 0xff9   :  { %v1700_v25 = vpop.f32.mrf.mxu0 }
 0xffa   :  { %v1591_v5 = vsel %vm1590_vm5, %v1587_v24, -inf }
 0xffb   :  { %1592 = vmax.xlane.f32.xlu1 %v1591_v5 }
0x1084   :  { %v1593_v27 = vpop.xlane.xlu1 %1592 }
0x1085   :  { %v1594_v44 = vsub.f32 %v1587_v24, %v1593_v27 }
0x1087   :  { %v1595_v28 = vmul.f32 1.442695, %v1594_v44 }
0x1089   :  { %1896 = vpow2.f32 %v1595_v28 }
0x1096   :  { %v1897_v12 = vpop.eup %1896 }
0x1097   :  { %v1597_v20 = vsel %vm1590_vm5, %v1897_v12, 0.0 }
0x1098   :  { %1598 = vadd.xlane.f32.xlu0 %v1597_v20 }
0x1121   :  { %v1599_v7 = vpop.xlane.xlu0 %1598 }
0x1122   :  { %1898 = vlog2.f32 %v1599_v7 }
0x112f   :  { %v1899_v35 = vpop.eup %1898 }
0x1130   :  { %v1601_v23 = vmul.f32 0.6931472, %v1899_v35 }
0x1132   :  { %v1602_v3 = vadd.f32 %v1601_v23, %v1593_v27 }
0x1134   :  { %v1603_v54 = vsub.f32 %v1587_v24, %v1602_v3 }
0x1136   :  { %1604 = vst.msk [vmem:[%s2926_s6] sm:$0xff] %vm1590_vm5, %v1603_v54 }

</bundles_post_ra>
